<compile_context>
chip_gen: v6e
topology: v6e:2x2x1
jax: 0.10.0
libtpu: 0.0.40
codegen_flags: <defaults>
</compile_context>

<pallas_src>
import math
from functools import partial

import jax
import jax.numpy as jnp
from jax.experimental import pallas as pl
from jax.experimental.pallas import tpu as pltpu

NBITS = 4
QN_S = -(2 ** (NBITS - 1))      # signed range  [-8, 7]
QP_S = 2 ** (NBITS - 1) - 1
QN_U = 0                        # unsigned range [0, 15]  (attn_act)
QP_U = 2 ** NBITS - 1
LN_EPS = 1e-5


def _layernorm(x, g, b):
    mu = jnp.mean(x, axis=-1, keepdims=True)
    var = jnp.mean(jnp.square(x - mu), axis=-1, keepdims=True)
    return (x - mu) * jax.lax.rsqrt(var + LN_EPS) * g + b


def _qlevels(x, mul, zp, qn, qp):
    # ActQ / ActQ_v2 forward (eval): integer quantization levels; `mul` is the
    # (pre-inverted / pre-folded) scale so this is one fused multiply-add + round/clip.
    return jnp.round(jnp.clip(x * mul + zp, qn, qp))


def _split_heads(mat2d, col0, num_heads, hd):
    # (N, 3C) -> (H, N, hd) for one of q/k/v.  Static lane slices stacked once on a new
    # leading head axis; robust to lower on every generation.  (Reshape-splitting a
    # non-128 lane factor is a Mosaic lowering risk at hd<128, so the slice+stack form is
    # kept; at deployment pad hd to 128 per the review.)
    return jnp.stack(
        [mat2d[:, col0 + h * hd: col0 + (h + 1) * hd] for h in range(num_heads)],
        axis=0)


# ------------------------------ fused Q_Block kernel ------------------------------ #
def q_block_kernel(sc, x_ref, g1_ref, b1_ref,
                   wqkv_ref, sqkv_ref, cqkv_ref,
                   gq_ref, bq_ref, gk_ref, bk_ref,
                   wproj_ref, sproj_ref, bproj_ref,
                   g2_ref, b2_ref,
                   w1_ref, s1_ref, bb1_ref,
                   w2_ref, s2_ref, bb2_ref,
                   out_ref, *, num_heads):
    bf16 = jnp.bfloat16
    f32 = jnp.float32

    x_in = x_ref[0]                                  # (N, C) residual-stream input
    N, C = x_in.shape
    hd = C // num_heads

    inv_a_a, zp_a = sc[0], sc[1]                     # qkv.act   (1/alpha, round(zp).mean)
    inv_a_q, zp_q = sc[2], sc[3]                     # q_act
    inv_a_k, zp_k = sc[4], sc[5]                     # k_act
    v_scl, zp_v = sc[6], sc[7]                       # v_act: alpha_a / alpha_v
    logit_scl = sc[8]                                # hd^-0.5 * alpha_q * alpha_k
    inv_a_at, zp_at, zp_at_sub = sc[9], sc[10], sc[11]  # attn_act (unsigned) + round(zp)
    p_scl, zp_p = sc[12], sc[13]                     # proj.act: alpha_at*alpha_v/alpha_p
    inv_a_f1, zp_f1 = sc[14], sc[15]                 # mlp fc1.act
    inv_a_f2, zp_f2 = sc[16], sc[17]                 # mlp fc2.act

    # -------------------- attention branch: x1 = x0 + attn(norm1(x0)) -------------------- #
    xn = _layernorm(x_in, g1_ref[0], b1_ref[0])
    xq = _qlevels(xn, inv_a_a, zp_a, QN_S, QP_S)                      # signed 4-bit levels

    # bf16 level x bf16 level matmul on the MXU (exact for 4-bit levels); per-out-column
    # weight alpha and the precomputed qkv bias-correction applied on the f32 accumulator.
    qkv = jnp.dot(xq.astype(bf16), wqkv_ref[...],
                  preferred_element_type=f32)                          # (N, 3C)
    qkv = qkv * sqkv_ref[...] + cqkv_ref[...]

    q0 = _split_heads(qkv, 0 * C, num_heads, hd)                      # (H, N, hd)
    k0 = _split_heads(qkv, 1 * C, num_heads, hd)
    v0 = _split_heads(qkv, 2 * C, num_heads, hd)

    q2 = _qlevels(_layernorm(q0, gq_ref[0], bq_ref[0]), inv_a_q, zp_q, QN_S, QP_S)
    k2 = _qlevels(_layernorm(k0, gk_ref[0], bk_ref[0]), inv_a_k, zp_k, QN_S, QP_S)
    v2 = _qlevels(v0, v_scl, zp_v, QN_S, QP_S)                        # v_act(v0 * alpha_a)

    logits = jnp.einsum('hqd,hkd->hqk', q2.astype(bf16), k2.astype(bf16),
                        preferred_element_type=f32) * logit_scl
    m = jnp.max(logits, axis=-1, keepdims=True)
    e = jnp.exp(logits - m)
    attn = e * pl.reciprocal(jnp.sum(e, axis=-1, keepdims=True), approx=True)

    # attn_act (unsigned ActQ) + /alpha_at + round.  Levels a1 are integers, so
    # round(a1 - zp) == a1 - round(zp) under round-half-even; round(zp) is precomputed
    # (zp_at_sub) -> one round over the (H,N,N) tensor instead of two.
    a1 = jnp.round(jnp.clip(attn * inv_a_at + zp_at, QN_U, QP_U))
    a2 = a1 - zp_at_sub

    ho = jnp.einsum('hqk,hkd->hqd', a2.astype(bf16), v2.astype(bf16),
                    preferred_element_type=f32)                        # (H, N, hd)

    # Head merge -> (N, C) (same column order as torch's transpose(1,2).reshape(B,N,C)),
    # proj.act quant once on the merged tensor, then ONE (N,C)@(C,C) MXU matmul against
    # the K-major proj level weight (replaces per-head K=hd matmuls + H-way sum).
    ho_m = jnp.concatenate([ho[h] for h in range(num_heads)], axis=-1)  # (N, C)
    xp = _qlevels(ho_m, p_scl, zp_p, QN_S, QP_S)
    proj = jnp.dot(xp.astype(bf16), wproj_ref[...], preferred_element_type=f32)
    proj = proj * sproj_ref[...] + bproj_ref[...]                      # (N, C)

    x1 = x_in + proj

    # ------------------------ MLP branch: x2 = x1 + mlp(norm2(x1)) ----------------------- #
    # TODO(synk): Q_Mlp source is not provided; reconstructed as quantized
    # fc1 -> GELU -> fc2 following the file's LinearQ_v2 / ActQ_v2 dequant pattern.
    xn2 = _layernorm(x1, g2_ref[0], b2_ref[0])
    h1 = _qlevels(xn2, inv_a_f1, zp_f1, QN_S, QP_S)
    h = jnp.dot(h1.astype(bf16), w1_ref[...], preferred_element_type=f32)
    h = h * s1_ref[...] + bb1_ref[...]
    # TODO(synk): torch nn.GELU default is exact erf; tanh approximation for robust lowering
    # (review's h*sigmoid(1.702h) variant is cheaper still if 4-bit requant hides the error).
    h = 0.5 * h * (1.0 + jnp.tanh(0.7978845608028654 * (h + 0.044715 * h * h * h)))
    h2 = _qlevels(h, inv_a_f2, zp_f2, QN_S, QP_S)
    o = jnp.dot(h2.astype(bf16), w2_ref[...], preferred_element_type=f32)
    o = o * s2_ref[...] + bb2_ref[...]

    out_ref[0] = x1 + o


# ------------------- wrapper-side (hoisted) weight quant & scale folding ------------------- #
def _prep_kernel_inputs(params, num_heads):
    w_qkv, aw_qkv = params["w_qkv"], params["aw_qkv"]
    w_proj, aw_proj = params["w_proj"], params["aw_proj"]
    w_fc1, aw_fc1 = params["w_fc1"], params["aw_fc1"]
    w_fc2, aw_fc2 = params["w_fc2"], params["aw_fc2"]
    C = w_proj.shape[0]
    hidden = w_fc1.shape[0]
    hd = C // num_heads

    def levels(w, aw):                      # LinearQ_v2 weight levels, per-out-row alpha
        return jnp.round(jnp.clip(w / aw[:, None], QN_S, QP_S))

    # ActQ alpha / zero-point means (the reference forward only uses .mean()).
    a_a = params["a_qkv"].mean()
    zp_a_r = jnp.round(params["z_qkv"]).mean()        # rounded zp mean (used for quant)
    zp_a_raw = params["z_qkv"].mean()                 # raw zp mean (qkv bias correction)
    a_q = params["a_q"].mean();   zp_q = jnp.round(params["z_q"]).mean()
    a_k = params["a_k"].mean();   zp_k = jnp.round(params["z_k"]).mean()
    a_v = params["a_v"].mean();   zp_v = jnp.round(params["z_v"]).mean()
    a_at = params["a_at"].mean(); zp_at = jnp.round(params["z_at"]).mean()
    zp_at_sub = jnp.round(zp_at)                      # round(round(z).mean()) for a2
    a_p = params["a_p"].mean();   zp_p = jnp.round(params["z_p"]).mean()
    a_f1 = params["a_f1"].mean(); zp_f1 = jnp.round(params["z_f1"]).mean()
    a_f2 = params["a_f2"].mean(); zp_f2 = jnp.round(params["z_f2"]).mean()

    # qkv: bf16 level weights (K-major), per-out-col weight alpha, bias-correction term.
    # TODO(synk): int8 levels (v5e/v6e) / fp8 e4m3 levels (v7x) halve weight bytes and
    # double MXU throughput; kept bf16 here for generation-agnostic lowering.
    lq = levels(w_qkv, aw_qkv)                                   # (3C, C)
    wqkv_t = lq.T.astype(jnp.bfloat16)                           # (C, 3C)
    sqkv = aw_qkv.reshape(1, 3 * C)
    w_fake = lq * aw_qkv[:, None]
    cqkv = ((-(zp_a_raw * a_a)) * jnp.sum(w_fake, axis=1) + params["b_qkv"]) / a_a
    cqkv = cqkv.reshape(1, 3 * C)

    # proj: full (C, C) K-major level weight (heads merged in-kernel before one matmul);
    # fold proj.act alpha into the per-column output scale.
    lp = levels(w_proj, aw_proj)                                 # (C, C)
    wproj_t = lp.T.astype(jnp.bfloat16)                          # (C, C) K-major
    sproj = (aw_proj * a_p).reshape(1, C)

    # mlp (fc1 / fc2), same treatment.
    l1 = levels(w_fc1, aw_fc1)
    w1_t = l1.T.astype(jnp.bfloat16)                             # (C, hidden)
    s1 = (aw_fc1 * a_f1).reshape(1, hidden)
    l2 = levels(w_fc2, aw_fc2)
    w2_t = l2.T.astype(jnp.bfloat16)                             # (hidden, C)
    s2 = (aw_fc2 * a_f2).reshape(1, C)

    scale = hd ** -0.5
    scalars = jnp.stack([
        1.0 / a_a, zp_a_r,
        1.0 / a_q, zp_q,
        1.0 / a_k, zp_k,
        a_a / a_v, zp_v,
        scale * a_q * a_k,
        1.0 / a_at, zp_at, zp_at_sub,
        (a_at * a_v) / a_p, zp_p,
        1.0 / a_f1, zp_f1,
        1.0 / a_f2, zp_f2,
    ]).astype(jnp.float32)

    return dict(scalars=scalars,
                wqkv_t=wqkv_t, sqkv=sqkv, cqkv=cqkv,
                wproj_t=wproj_t, sproj=sproj, bproj=params["b_proj"].reshape(1, C),
                w1_t=w1_t, s1=s1, b1=params["b_fc1"].reshape(1, hidden),
                w2_t=w2_t, s2=s2, b2=params["b_fc2"].reshape(1, C))


def _fixed(shape):
    # Grid-invariant block (weights / scales / norm params): same tile for every b.
    # TODO(synk): at ViT-Base scale mark these pipeline_mode=pl.Buffered(1) to drop the
    # redundant second pipeline buffer (halves resident weight VMEM).
    nd = len(shape)
    return pl.BlockSpec(shape, lambda b: (0,) * nd)


def _vmem_limit_bytes():
    # Generation-aware scoped-VMEM limit (review): v7x has 64 MiB/TC, v5e/v6e have 128 MiB.
    try:
        kind = jax.devices()[0].device_kind.lower()
    except Exception:
        kind = ""
    if "v7" in kind:
        return 48 * 1024 * 1024
    return 64 * 1024 * 1024


@partial(jax.jit, static_argnames=("num_heads",))
def q_block_forward(x0, params, num_heads):
    B, N, C = x0.shape
    hd = C // num_heads
    hidden = params["w_fc1"].shape[0]
    prep = _prep_kernel_inputs(params, num_heads)

    in_specs = [
        pl.BlockSpec(memory_space=pltpu.MemorySpace.SMEM),            # folded quant scalars
        pl.BlockSpec((1, N, C), lambda b: (b, 0, 0)),                 # x0
        _fixed((1, C)), _fixed((1, C)),                               # norm1 gamma / beta
        _fixed((C, 3 * C)), _fixed((1, 3 * C)), _fixed((1, 3 * C)),   # qkv levels / alpha_w / bias corr
        _fixed((1, hd)), _fixed((1, hd)),                             # norm_q gamma / beta
        _fixed((1, hd)), _fixed((1, hd)),                             # norm_k gamma / beta
        _fixed((C, C)), _fixed((1, C)), _fixed((1, C)),               # proj levels / scale / bias
        _fixed((1, C)), _fixed((1, C)),                               # norm2 gamma / beta
        _fixed((C, hidden)), _fixed((1, hidden)), _fixed((1, hidden)),  # fc1 levels / scale / bias
        _fixed((hidden, C)), _fixed((1, C)), _fixed((1, C)),          # fc2 levels / scale / bias
    ]
    return pl.pallas_call(
        partial(q_block_kernel, num_heads=num_heads),
        out_shape=jax.ShapeDtypeStruct((B, N, C), jnp.float32),
        grid=(B,),
        in_specs=in_specs,
        out_specs=pl.BlockSpec((1, N, C), lambda b: (b, 0, 0)),
        compiler_params=pltpu.CompilerParams(
            dimension_semantics=("parallel",),       # batch steps independent (v7x 2 TCs)
            vmem_limit_bytes=_vmem_limit_bytes()),
    )(prep["scalars"], x0,
      params["norm1_g"].reshape(1, C), params["norm1_b"].reshape(1, C),
      prep["wqkv_t"], prep["sqkv"], prep["cqkv"],
      params["normq_g"].reshape(1, hd), params["normq_b"].reshape(1, hd),
      params["normk_g"].reshape(1, hd), params["normk_b"].reshape(1, hd),
      prep["wproj_t"], prep["sproj"], prep["bproj"],
      params["norm2_g"].reshape(1, C), params["norm2_b"].reshape(1, C),
      prep["w1_t"], prep["s1"], prep["b1"],
      prep["w2_t"], prep["s2"], prep["b2"])


# ------------------------ deterministic parameter construction ------------------------ #
def init_params(key, C, num_heads, hidden):
    hd = C // num_heads
    ks = iter(jax.random.split(key, 48))
    nrm = lambda shape: jax.random.normal(next(ks), shape, jnp.float32)

    p = {}
    p["norm1_g"] = 1.0 + 0.02 * nrm((C,));   p["norm1_b"] = 0.02 * nrm((C,))
    p["norm2_g"] = 1.0 + 0.02 * nrm((C,));   p["norm2_b"] = 0.02 * nrm((C,))
    p["normq_g"] = 1.0 + 0.02 * nrm((hd,));  p["normq_b"] = 0.02 * nrm((hd,))
    p["normk_g"] = 1.0 + 0.02 * nrm((hd,));  p["normk_b"] = 0.02 * nrm((hd,))

    p["w_qkv"] = 0.02 * nrm((3 * C, C));     p["b_qkv"] = 0.02 * nrm((3 * C,))
    p["aw_qkv"] = 2.0 * jnp.mean(jnp.abs(p["w_qkv"]), axis=1) / math.sqrt(QP_S)
    p["w_proj"] = 0.02 * nrm((C, C));        p["b_proj"] = 0.02 * nrm((C,))
    p["aw_proj"] = 2.0 * jnp.mean(jnp.abs(p["w_proj"]), axis=1) / math.sqrt(QP_S)
    p["w_fc1"] = 0.02 * nrm((hidden, C));    p["b_fc1"] = 0.02 * nrm((hidden,))
    p["aw_fc1"] = 2.0 * jnp.mean(jnp.abs(p["w_fc1"]), axis=1) / math.sqrt(QP_S)
    p["w_fc2"] = 0.02 * nrm((C, hidden));    p["b_fc2"] = 0.02 * nrm((C,))
    p["aw_fc2"] = 2.0 * jnp.mean(jnp.abs(p["w_fc2"]), axis=1) / math.sqrt(QP_S)

    # per-channel activation-quant params; the reference forward only uses their means
    def act(shape, a_scale):
        a = a_scale * (1.0 + 0.2 * jnp.abs(nrm(shape)))
        z = 0.3 * nrm(shape)
        return a, z

    p["a_qkv"], p["z_qkv"] = act((C,), 0.08)          # qkv.act    (signed)
    p["a_q"],  p["z_q"]  = act((num_heads,), 0.10)    # q_act      (signed)
    p["a_k"],  p["z_k"]  = act((num_heads,), 0.10)    # k_act      (signed)
    p["a_v"],  p["z_v"]  = act((num_heads,), 0.05)    # v_act      (signed)
    p["a_at"], p["z_at"] = act((num_heads,), 0.07)    # attn_act   (unsigned)
    p["a_p"],  p["z_p"]  = act((C,), 0.06)            # proj.act   (signed)
    p["a_f1"], p["z_f1"] = act((C,), 0.08)            # mlp fc1.act (signed)
    p["a_f2"], p["z_f2"] = act((hidden,), 0.08)       # mlp fc2.act (signed)
    return p


if __name__ == "__main__":
    B, N, C, H = 2, 8, 32, 4            # batch, tokens, dim, heads  (head_dim = 8)
    hidden = int(C * 4.0)               # mlp_ratio = 4.0
    key = jax.random.PRNGKey(0)
    kx, kp = jax.random.split(key)
    x0 = jax.random.normal(kx, (B, N, C), jnp.float32)
    params = init_params(kp, C, H, hidden)

    out = q_block_forward(x0, params, num_heads=H)
    jax.block_until_ready(out)
    assert out.shape == (B, N, C)
    assert not bool(jnp.isnan(out).any())
    print("KERNEL_OK")
</pallas_src>

<mosaic_0001>
module attributes {stable_mosaic.version = 11 : i64} {
  func.func @q_block_kernel(%arg0: i32, %arg1: memref<18xf32, #tpu.memory_space<smem>>, %arg2: memref<1x8x32xf32, #tpu.memory_space<vmem>>, %arg3: memref<1x32xf32, #tpu.memory_space<vmem>>, %arg4: memref<1x32xf32, #tpu.memory_space<vmem>>, %arg5: memref<32x96xbf16, #tpu.memory_space<vmem>>, %arg6: memref<1x96xf32, #tpu.memory_space<vmem>>, %arg7: memref<1x96xf32, #tpu.memory_space<vmem>>, %arg8: memref<1x8xf32, #tpu.memory_space<vmem>>, %arg9: memref<1x8xf32, #tpu.memory_space<vmem>>, %arg10: memref<1x8xf32, #tpu.memory_space<vmem>>, %arg11: memref<1x8xf32, #tpu.memory_space<vmem>>, %arg12: memref<32x32xbf16, #tpu.memory_space<vmem>>, %arg13: memref<1x32xf32, #tpu.memory_space<vmem>>, %arg14: memref<1x32xf32, #tpu.memory_space<vmem>>, %arg15: memref<1x32xf32, #tpu.memory_space<vmem>>, %arg16: memref<1x32xf32, #tpu.memory_space<vmem>>, %arg17: memref<32x128xbf16, #tpu.memory_space<vmem>>, %arg18: memref<1x128xf32, #tpu.memory_space<vmem>>, %arg19: memref<1x128xf32, #tpu.memory_space<vmem>>, %arg20: memref<128x32xbf16, #tpu.memory_space<vmem>>, %arg21: memref<1x32xf32, #tpu.memory_space<vmem>>, %arg22: memref<1x32xf32, #tpu.memory_space<vmem>>, %arg23: memref<1x8x32xf32, #tpu.memory_space<vmem>>) attributes {dimension_semantics = [#tpu.dimension_semantics<parallel>], iteration_bounds = array<i64: 2>, scalar_prefetch = 0 : i64, scratch_operands = 0 : i64, tpu.core_type = #tpu.core_type<tc>, window_params = [{transform_indices = @transform_0, window_bounds = array<i64: 18>}, {transform_indices = @transform_1, window_bounds = array<i64: 1, 8, 32>}, {pipeline_mode = #tpu.pipeline_mode<synchronous>, transform_indices = @transform_2, window_bounds = array<i64: 1, 32>}, {pipeline_mode = #tpu.pipeline_mode<synchronous>, transform_indices = @transform_3, window_bounds = array<i64: 1, 32>}, {pipeline_mode = #tpu.pipeline_mode<synchronous>, transform_indices = @transform_4, window_bounds = array<i64: 32, 96>}, {pipeline_mode = #tpu.pipeline_mode<synchronous>, transform_indices = @transform_5, window_bounds = array<i64: 1, 96>}, {pipeline_mode = #tpu.pipeline_mode<synchronous>, transform_indices = @transform_6, window_bounds = array<i64: 1, 96>}, {pipeline_mode = #tpu.pipeline_mode<synchronous>, transform_indices = @transform_7, window_bounds = array<i64: 1, 8>}, {pipeline_mode = #tpu.pipeline_mode<synchronous>, transform_indices = @transform_8, window_bounds = array<i64: 1, 8>}, {pipeline_mode = #tpu.pipeline_mode<synchronous>, transform_indices = @transform_9, window_bounds = array<i64: 1, 8>}, {pipeline_mode = #tpu.pipeline_mode<synchronous>, transform_indices = @transform_10, window_bounds = array<i64: 1, 8>}, {pipeline_mode = #tpu.pipeline_mode<synchronous>, transform_indices = @transform_11, window_bounds = array<i64: 32, 32>}, {pipeline_mode = #tpu.pipeline_mode<synchronous>, transform_indices = @transform_12, window_bounds = array<i64: 1, 32>}, {pipeline_mode = #tpu.pipeline_mode<synchronous>, transform_indices = @transform_13, window_bounds = array<i64: 1, 32>}, {pipeline_mode = #tpu.pipeline_mode<synchronous>, transform_indices = @transform_14, window_bounds = array<i64: 1, 32>}, {pipeline_mode = #tpu.pipeline_mode<synchronous>, transform_indices = @transform_15, window_bounds = array<i64: 1, 32>}, {pipeline_mode = #tpu.pipeline_mode<synchronous>, transform_indices = @transform_16, window_bounds = array<i64: 32, 128>}, {pipeline_mode = #tpu.pipeline_mode<synchronous>, transform_indices = @transform_17, window_bounds = array<i64: 1, 128>}, {pipeline_mode = #tpu.pipeline_mode<synchronous>, transform_indices = @transform_18, window_bounds = array<i64: 1, 128>}, {pipeline_mode = #tpu.pipeline_mode<synchronous>, transform_indices = @transform_19, window_bounds = array<i64: 128, 32>}, {pipeline_mode = #tpu.pipeline_mode<synchronous>, transform_indices = @transform_20, window_bounds = array<i64: 1, 32>}, {pipeline_mode = #tpu.pipeline_mode<synchronous>, transform_indices = @transform_21, window_bounds = array<i64: 1, 32>}, {transform_indices = @transform_22, window_bounds = array<i64: 1, 8, 32>}]} {
    %c0 = arith.constant 0 : index
    %c0_0 = arith.constant 0 : index
    %c0_1 = arith.constant 0 : index
    %0 = vector.load %arg2[%c0, %c0_0, %c0_1] : memref<1x8x32xf32, #tpu.memory_space<vmem>>, vector<1x8x32xf32>
    %1 = vector.shape_cast %0 : vector<1x8x32xf32> to vector<8x32xf32>
    %c0_2 = arith.constant 0 : index
    %2 = memref.load %arg1[%c0_2] : memref<18xf32, #tpu.memory_space<smem>>
    %c1 = arith.constant 1 : index
    %3 = memref.load %arg1[%c1] : memref<18xf32, #tpu.memory_space<smem>>
    %c2 = arith.constant 2 : index
    %4 = memref.load %arg1[%c2] : memref<18xf32, #tpu.memory_space<smem>>
    %c3 = arith.constant 3 : index
    %5 = memref.load %arg1[%c3] : memref<18xf32, #tpu.memory_space<smem>>
    %c4 = arith.constant 4 : index
    %6 = memref.load %arg1[%c4] : memref<18xf32, #tpu.memory_space<smem>>
    %c5 = arith.constant 5 : index
    %7 = memref.load %arg1[%c5] : memref<18xf32, #tpu.memory_space<smem>>
    %c6 = arith.constant 6 : index
    %8 = memref.load %arg1[%c6] : memref<18xf32, #tpu.memory_space<smem>>
    %c7 = arith.constant 7 : index
    %9 = memref.load %arg1[%c7] : memref<18xf32, #tpu.memory_space<smem>>
    %c8 = arith.constant 8 : index
    %10 = memref.load %arg1[%c8] : memref<18xf32, #tpu.memory_space<smem>>
    %c9 = arith.constant 9 : index
    %11 = memref.load %arg1[%c9] : memref<18xf32, #tpu.memory_space<smem>>
    %c10 = arith.constant 10 : index
    %12 = memref.load %arg1[%c10] : memref<18xf32, #tpu.memory_space<smem>>
    %c11 = arith.constant 11 : index
    %13 = memref.load %arg1[%c11] : memref<18xf32, #tpu.memory_space<smem>>
    %c12 = arith.constant 12 : index
    %14 = memref.load %arg1[%c12] : memref<18xf32, #tpu.memory_space<smem>>
    %c13 = arith.constant 13 : index
    %15 = memref.load %arg1[%c13] : memref<18xf32, #tpu.memory_space<smem>>
    %c14 = arith.constant 14 : index
    %16 = memref.load %arg1[%c14] : memref<18xf32, #tpu.memory_space<smem>>
    %c15 = arith.constant 15 : index
    %17 = memref.load %arg1[%c15] : memref<18xf32, #tpu.memory_space<smem>>
    %c16 = arith.constant 16 : index
    %18 = memref.load %arg1[%c16] : memref<18xf32, #tpu.memory_space<smem>>
    %c17 = arith.constant 17 : index
    %19 = memref.load %arg1[%c17] : memref<18xf32, #tpu.memory_space<smem>>
    %c0_3 = arith.constant 0 : index
    %c0_4 = arith.constant 0 : index
    %20 = vector.load %arg3[%c0_3, %c0_4] : memref<1x32xf32, #tpu.memory_space<vmem>>, vector<1x32xf32>
    %21 = vector.shape_cast %20 : vector<1x32xf32> to vector<32xf32>
    %c0_5 = arith.constant 0 : index
    %c0_6 = arith.constant 0 : index
    %22 = vector.load %arg4[%c0_5, %c0_6] : memref<1x32xf32, #tpu.memory_space<vmem>>, vector<1x32xf32>
    %23 = vector.shape_cast %22 : vector<1x32xf32> to vector<32xf32>
    %cst = arith.constant dense<0.000000e+00> : vector<8xf32>
    %24 = vector.multi_reduction <add>, %1, %cst [1] : vector<8x32xf32> to vector<8xf32>
    %25 = vector.shape_cast %24 : vector<8xf32> to vector<8x1xf32>
    %cst_7 = arith.constant 3.200000e+01 : f32
    %26 = vector.broadcast %cst_7 : f32 to vector<8x1xf32>
    %27 = arith.divf %25, %26 : vector<8x1xf32>
    %28 = vector.broadcast %27 : vector<8x1xf32> to vector<8x32xf32>
    %29 = arith.subf %1, %28 : vector<8x32xf32>
    %30 = arith.mulf %29, %29 : vector<8x32xf32>
    %cst_8 = arith.constant dense<0.000000e+00> : vector<8xf32>
    %31 = vector.multi_reduction <add>, %30, %cst_8 [1] : vector<8x32xf32> to vector<8xf32>
    %32 = vector.shape_cast %31 : vector<8xf32> to vector<8x1xf32>
    %cst_9 = arith.constant 3.200000e+01 : f32
    %33 = vector.broadcast %cst_9 : f32 to vector<8x1xf32>
    %34 = arith.divf %32, %33 : vector<8x1xf32>
    %35 = vector.broadcast %27 : vector<8x1xf32> to vector<8x32xf32>
    %36 = arith.subf %1, %35 : vector<8x32xf32>
    %cst_10 = arith.constant 9.99999974E-6 : f32
    %37 = vector.broadcast %cst_10 : f32 to vector<8x1xf32>
    %38 = arith.addf %34, %37 : vector<8x1xf32>
    %39 = math.rsqrt %38 : vector<8x1xf32>
    %40 = vector.broadcast %39 : vector<8x1xf32> to vector<8x32xf32>
    %41 = arith.mulf %36, %40 : vector<8x32xf32>
    %42 = vector.shape_cast %21 : vector<32xf32> to vector<1x32xf32>
    %43 = vector.broadcast %42 : vector<1x32xf32> to vector<8x32xf32>
    %44 = arith.mulf %41, %43 : vector<8x32xf32>
    %45 = vector.shape_cast %23 : vector<32xf32> to vector<1x32xf32>
    %46 = vector.broadcast %45 : vector<1x32xf32> to vector<8x32xf32>
    %47 = arith.addf %44, %46 : vector<8x32xf32>
    %48 = vector.broadcast %2 : f32 to vector<8x32xf32>
    %49 = arith.mulf %47, %48 : vector<8x32xf32>
    %50 = vector.broadcast %3 : f32 to vector<8x32xf32>
    %51 = arith.addf %49, %50 : vector<8x32xf32>
    %c-8_i32 = arith.constant -8 : i32
    %c7_i32 = arith.constant 7 : i32
    %52 = arith.sitofp %c-8_i32 : i32 to f32
    %53 = vector.broadcast %52 : f32 to vector<8x32xf32>
    %54 = arith.maximumf %53, %51 : vector<8x32xf32>
    %55 = arith.sitofp %c7_i32 : i32 to f32
    %56 = vector.broadcast %55 : f32 to vector<8x32xf32>
    %57 = arith.minimumf %56, %54 : vector<8x32xf32>
    %58 = math.roundeven %57 : vector<8x32xf32>
    %59 = arith.truncf %58 : vector<8x32xf32> to vector<8x32xbf16>
    %c0_11 = arith.constant 0 : index
    %c0_12 = arith.constant 0 : index
    %60 = vector.load %arg5[%c0_11, %c0_12] : memref<32x96xbf16, #tpu.memory_space<vmem>>, vector<32x96xbf16>
    %cst_13 = arith.constant dense<0.000000e+00> : vector<8x96xf32>
    %61 = tpu.matmul %59, %60, %cst_13 {dimension_numbers = #tpu.dot_dimension_numbers<[1], [0], [0], [1], [0, 0, 1, 1], [], []>} : vector<8x32xbf16>, vector<32x96xbf16>, vector<8x96xf32> -> vector<8x96xf32>
    %c0_14 = arith.constant 0 : index
    %c0_15 = arith.constant 0 : index
    %62 = vector.load %arg6[%c0_14, %c0_15] : memref<1x96xf32, #tpu.memory_space<vmem>>, vector<1x96xf32>
    %63 = vector.broadcast %62 : vector<1x96xf32> to vector<8x96xf32>
    %64 = arith.mulf %61, %63 : vector<8x96xf32>
    %c0_16 = arith.constant 0 : index
    %c0_17 = arith.constant 0 : index
    %65 = vector.load %arg7[%c0_16, %c0_17] : memref<1x96xf32, #tpu.memory_space<vmem>>, vector<1x96xf32>
    %66 = vector.broadcast %65 : vector<1x96xf32> to vector<8x96xf32>
    %67 = arith.addf %64, %66 : vector<8x96xf32>
    %68 = vector.extract_strided_slice %67 {offsets = [0, 0], sizes = [8, 8], strides = [1, 1]} : vector<8x96xf32> to vector<8x8xf32>
    %69 = vector.extract_strided_slice %67 {offsets = [0, 8], sizes = [8, 8], strides = [1, 1]} : vector<8x96xf32> to vector<8x8xf32>
    %70 = vector.extract_strided_slice %67 {offsets = [0, 16], sizes = [8, 8], strides = [1, 1]} : vector<8x96xf32> to vector<8x8xf32>
    %71 = vector.extract_strided_slice %67 {offsets = [0, 24], sizes = [8, 8], strides = [1, 1]} : vector<8x96xf32> to vector<8x8xf32>
    %72 = vector.shape_cast %68 : vector<8x8xf32> to vector<1x8x8xf32>
    %73 = vector.shape_cast %69 : vector<8x8xf32> to vector<1x8x8xf32>
    %74 = vector.shape_cast %70 : vector<8x8xf32> to vector<1x8x8xf32>
    %75 = vector.shape_cast %71 : vector<8x8xf32> to vector<1x8x8xf32>
    %76 = tpu.concatenate %72, %73, %74, %75 in 0 : vector<1x8x8xf32>, vector<1x8x8xf32>, vector<1x8x8xf32>, vector<1x8x8xf32> -> vector<4x8x8xf32>
    %77 = vector.extract_strided_slice %67 {offsets = [0, 32], sizes = [8, 8], strides = [1, 1]} : vector<8x96xf32> to vector<8x8xf32>
    %78 = vector.extract_strided_slice %67 {offsets = [0, 40], sizes = [8, 8], strides = [1, 1]} : vector<8x96xf32> to vector<8x8xf32>
    %79 = vector.extract_strided_slice %67 {offsets = [0, 48], sizes = [8, 8], strides = [1, 1]} : vector<8x96xf32> to vector<8x8xf32>
    %80 = vector.extract_strided_slice %67 {offsets = [0, 56], sizes = [8, 8], strides = [1, 1]} : vector<8x96xf32> to vector<8x8xf32>
    %81 = vector.shape_cast %77 : vector<8x8xf32> to vector<1x8x8xf32>
    %82 = vector.shape_cast %78 : vector<8x8xf32> to vector<1x8x8xf32>
    %83 = vector.shape_cast %79 : vector<8x8xf32> to vector<1x8x8xf32>
    %84 = vector.shape_cast %80 : vector<8x8xf32> to vector<1x8x8xf32>
    %85 = tpu.concatenate %81, %82, %83, %84 in 0 : vector<1x8x8xf32>, vector<1x8x8xf32>, vector<1x8x8xf32>, vector<1x8x8xf32> -> vector<4x8x8xf32>
    %86 = vector.extract_strided_slice %67 {offsets = [0, 64], sizes = [8, 8], strides = [1, 1]} : vector<8x96xf32> to vector<8x8xf32>
    %87 = vector.extract_strided_slice %67 {offsets = [0, 72], sizes = [8, 8], strides = [1, 1]} : vector<8x96xf32> to vector<8x8xf32>
    %88 = vector.extract_strided_slice %67 {offsets = [0, 80], sizes = [8, 8], strides = [1, 1]} : vector<8x96xf32> to vector<8x8xf32>
    %89 = vector.extract_strided_slice %67 {offsets = [0, 88], sizes = [8, 8], strides = [1, 1]} : vector<8x96xf32> to vector<8x8xf32>
    %90 = vector.shape_cast %86 : vector<8x8xf32> to vector<1x8x8xf32>
    %91 = vector.shape_cast %87 : vector<8x8xf32> to vector<1x8x8xf32>
    %92 = vector.shape_cast %88 : vector<8x8xf32> to vector<1x8x8xf32>
    %93 = vector.shape_cast %89 : vector<8x8xf32> to vector<1x8x8xf32>
    %94 = tpu.concatenate %90, %91, %92, %93 in 0 : vector<1x8x8xf32>, vector<1x8x8xf32>, vector<1x8x8xf32>, vector<1x8x8xf32> -> vector<4x8x8xf32>
    %c0_18 = arith.constant 0 : index
    %c0_19 = arith.constant 0 : index
    %95 = vector.load %arg8[%c0_18, %c0_19] : memref<1x8xf32, #tpu.memory_space<vmem>>, vector<1x8xf32>
    %96 = vector.shape_cast %95 : vector<1x8xf32> to vector<8xf32>
    %c0_20 = arith.constant 0 : index
    %c0_21 = arith.constant 0 : index
    %97 = vector.load %arg9[%c0_20, %c0_21] : memref<1x8xf32, #tpu.memory_space<vmem>>, vector<1x8xf32>
    %98 = vector.shape_cast %97 : vector<1x8xf32> to vector<8xf32>
    %cst_22 = arith.constant dense<0.000000e+00> : vector<4x8xf32>
    %99 = vector.multi_reduction <add>, %76, %cst_22 [2] : vector<4x8x8xf32> to vector<4x8xf32>
    %100 = vector.shape_cast %99 : vector<4x8xf32> to vector<4x8x1xf32>
    %cst_23 = arith.constant 8.000000e+00 : f32
    %101 = vector.broadcast %cst_23 : f32 to vector<4x8x1xf32>
    %102 = arith.divf %100, %101 : vector<4x8x1xf32>
    %103 = vector.broadcast %102 : vector<4x8x1xf32> to vector<4x8x8xf32>
    %104 = arith.subf %76, %103 : vector<4x8x8xf32>
    %105 = arith.mulf %104, %104 : vector<4x8x8xf32>
    %cst_24 = arith.constant dense<0.000000e+00> : vector<4x8xf32>
    %106 = vector.multi_reduction <add>, %105, %cst_24 [2] : vector<4x8x8xf32> to vector<4x8xf32>
    %107 = vector.shape_cast %106 : vector<4x8xf32> to vector<4x8x1xf32>
    %cst_25 = arith.constant 8.000000e+00 : f32
    %108 = vector.broadcast %cst_25 : f32 to vector<4x8x1xf32>
    %109 = arith.divf %107, %108 : vector<4x8x1xf32>
    %110 = vector.broadcast %102 : vector<4x8x1xf32> to vector<4x8x8xf32>
    %111 = arith.subf %76, %110 : vector<4x8x8xf32>
    %cst_26 = arith.constant 9.99999974E-6 : f32
    %112 = vector.broadcast %cst_26 : f32 to vector<4x8x1xf32>
    %113 = arith.addf %109, %112 : vector<4x8x1xf32>
    %114 = math.rsqrt %113 : vector<4x8x1xf32>
    %115 = vector.broadcast %114 : vector<4x8x1xf32> to vector<4x8x8xf32>
    %116 = arith.mulf %111, %115 : vector<4x8x8xf32>
    %117 = vector.shape_cast %96 : vector<8xf32> to vector<1x1x8xf32>
    %118 = vector.broadcast %117 : vector<1x1x8xf32> to vector<4x8x8xf32>
    %119 = arith.mulf %116, %118 : vector<4x8x8xf32>
    %120 = vector.shape_cast %98 : vector<8xf32> to vector<1x1x8xf32>
    %121 = vector.broadcast %120 : vector<1x1x8xf32> to vector<4x8x8xf32>
    %122 = arith.addf %119, %121 : vector<4x8x8xf32>
    %123 = vector.broadcast %4 : f32 to vector<4x8x8xf32>
    %124 = arith.mulf %122, %123 : vector<4x8x8xf32>
    %125 = vector.broadcast %5 : f32 to vector<4x8x8xf32>
    %126 = arith.addf %124, %125 : vector<4x8x8xf32>
    %c-8_i32_27 = arith.constant -8 : i32
    %c7_i32_28 = arith.constant 7 : i32
    %127 = arith.sitofp %c-8_i32_27 : i32 to f32
    %128 = vector.broadcast %127 : f32 to vector<4x8x8xf32>
    %129 = arith.maximumf %128, %126 : vector<4x8x8xf32>
    %130 = arith.sitofp %c7_i32_28 : i32 to f32
    %131 = vector.broadcast %130 : f32 to vector<4x8x8xf32>
    %132 = arith.minimumf %131, %129 : vector<4x8x8xf32>
    %133 = math.roundeven %132 : vector<4x8x8xf32>
    %c0_29 = arith.constant 0 : index
    %c0_30 = arith.constant 0 : index
    %134 = vector.load %arg10[%c0_29, %c0_30] : memref<1x8xf32, #tpu.memory_space<vmem>>, vector<1x8xf32>
    %135 = vector.shape_cast %134 : vector<1x8xf32> to vector<8xf32>
    %c0_31 = arith.constant 0 : index
    %c0_32 = arith.constant 0 : index
    %136 = vector.load %arg11[%c0_31, %c0_32] : memref<1x8xf32, #tpu.memory_space<vmem>>, vector<1x8xf32>
    %137 = vector.shape_cast %136 : vector<1x8xf32> to vector<8xf32>
    %cst_33 = arith.constant dense<0.000000e+00> : vector<4x8xf32>
    %138 = vector.multi_reduction <add>, %85, %cst_33 [2] : vector<4x8x8xf32> to vector<4x8xf32>
    %139 = vector.shape_cast %138 : vector<4x8xf32> to vector<4x8x1xf32>
    %cst_34 = arith.constant 8.000000e+00 : f32
    %140 = vector.broadcast %cst_34 : f32 to vector<4x8x1xf32>
    %141 = arith.divf %139, %140 : vector<4x8x1xf32>
    %142 = vector.broadcast %141 : vector<4x8x1xf32> to vector<4x8x8xf32>
    %143 = arith.subf %85, %142 : vector<4x8x8xf32>
    %144 = arith.mulf %143, %143 : vector<4x8x8xf32>
    %cst_35 = arith.constant dense<0.000000e+00> : vector<4x8xf32>
    %145 = vector.multi_reduction <add>, %144, %cst_35 [2] : vector<4x8x8xf32> to vector<4x8xf32>
    %146 = vector.shape_cast %145 : vector<4x8xf32> to vector<4x8x1xf32>
    %cst_36 = arith.constant 8.000000e+00 : f32
    %147 = vector.broadcast %cst_36 : f32 to vector<4x8x1xf32>
    %148 = arith.divf %146, %147 : vector<4x8x1xf32>
    %149 = vector.broadcast %141 : vector<4x8x1xf32> to vector<4x8x8xf32>
    %150 = arith.subf %85, %149 : vector<4x8x8xf32>
    %cst_37 = arith.constant 9.99999974E-6 : f32
    %151 = vector.broadcast %cst_37 : f32 to vector<4x8x1xf32>
    %152 = arith.addf %148, %151 : vector<4x8x1xf32>
    %153 = math.rsqrt %152 : vector<4x8x1xf32>
    %154 = vector.broadcast %153 : vector<4x8x1xf32> to vector<4x8x8xf32>
    %155 = arith.mulf %150, %154 : vector<4x8x8xf32>
    %156 = vector.shape_cast %135 : vector<8xf32> to vector<1x1x8xf32>
    %157 = vector.broadcast %156 : vector<1x1x8xf32> to vector<4x8x8xf32>
    %158 = arith.mulf %155, %157 : vector<4x8x8xf32>
    %159 = vector.shape_cast %137 : vector<8xf32> to vector<1x1x8xf32>
    %160 = vector.broadcast %159 : vector<1x1x8xf32> to vector<4x8x8xf32>
    %161 = arith.addf %158, %160 : vector<4x8x8xf32>
    %162 = vector.broadcast %6 : f32 to vector<4x8x8xf32>
    %163 = arith.mulf %161, %162 : vector<4x8x8xf32>
    %164 = vector.broadcast %7 : f32 to vector<4x8x8xf32>
    %165 = arith.addf %163, %164 : vector<4x8x8xf32>
    %c-8_i32_38 = arith.constant -8 : i32
    %c7_i32_39 = arith.constant 7 : i32
    %166 = arith.sitofp %c-8_i32_38 : i32 to f32
    %167 = vector.broadcast %166 : f32 to vector<4x8x8xf32>
    %168 = arith.maximumf %167, %165 : vector<4x8x8xf32>
    %169 = arith.sitofp %c7_i32_39 : i32 to f32
    %170 = vector.broadcast %169 : f32 to vector<4x8x8xf32>
    %171 = arith.minimumf %170, %168 : vector<4x8x8xf32>
    %172 = math.roundeven %171 : vector<4x8x8xf32>
    %173 = vector.broadcast %8 : f32 to vector<4x8x8xf32>
    %174 = arith.mulf %94, %173 : vector<4x8x8xf32>
    %175 = vector.broadcast %9 : f32 to vector<4x8x8xf32>
    %176 = arith.addf %174, %175 : vector<4x8x8xf32>
    %c-8_i32_40 = arith.constant -8 : i32
    %c7_i32_41 = arith.constant 7 : i32
    %177 = arith.sitofp %c-8_i32_40 : i32 to f32
    %178 = vector.broadcast %177 : f32 to vector<4x8x8xf32>
    %179 = arith.maximumf %178, %176 : vector<4x8x8xf32>
    %180 = arith.sitofp %c7_i32_41 : i32 to f32
    %181 = vector.broadcast %180 : f32 to vector<4x8x8xf32>
    %182 = arith.minimumf %181, %179 : vector<4x8x8xf32>
    %183 = math.roundeven %182 : vector<4x8x8xf32>
    %184 = arith.truncf %133 : vector<4x8x8xf32> to vector<4x8x8xbf16>
    %185 = arith.truncf %172 : vector<4x8x8xf32> to vector<4x8x8xbf16>
    "tpu.trace_start"() <{level = 10 : i32, message = "hqd,hkd->hqk"}> : () -> ()
    %cst_42 = arith.constant dense<0.000000e+00> : vector<4x8x8xf32>
    %186 = tpu.matmul %184, %185, %cst_42 {dimension_numbers = #tpu.dot_dimension_numbers<[2], [2], [1], [1], [0, 0, 0, 1, 1, 1], [0], [0]>} : vector<4x8x8xbf16>, vector<4x8x8xbf16>, vector<4x8x8xf32> -> vector<4x8x8xf32>
    "tpu.trace_stop"() : () -> ()
    %187 = vector.broadcast %10 : f32 to vector<4x8x8xf32>
    %188 = arith.mulf %186, %187 : vector<4x8x8xf32>
    %cst_43 = arith.constant dense<0xFF800000> : vector<4x8xf32>
    %189 = vector.multi_reduction <maximumf>, %188, %cst_43 [2] : vector<4x8x8xf32> to vector<4x8xf32>
    %190 = vector.shape_cast %189 : vector<4x8xf32> to vector<4x8x1xf32>
    %191 = vector.broadcast %190 : vector<4x8x1xf32> to vector<4x8x8xf32>
    %192 = arith.subf %188, %191 : vector<4x8x8xf32>
    %193 = math.exp %192 : vector<4x8x8xf32>
    %cst_44 = arith.constant dense<0.000000e+00> : vector<4x8xf32>
    %194 = vector.multi_reduction <add>, %193, %cst_44 [2] : vector<4x8x8xf32> to vector<4x8xf32>
    %195 = vector.shape_cast %194 : vector<4x8xf32> to vector<4x8x1xf32>
    %196 = tpu.reciprocal %195 {approx = true} : vector<4x8x1xf32> -> vector<4x8x1xf32>
    %197 = vector.broadcast %196 : vector<4x8x1xf32> to vector<4x8x8xf32>
    %198 = arith.mulf %193, %197 : vector<4x8x8xf32>
    %199 = vector.broadcast %11 : f32 to vector<4x8x8xf32>
    %200 = arith.mulf %198, %199 : vector<4x8x8xf32>
    %201 = vector.broadcast %12 : f32 to vector<4x8x8xf32>
    %202 = arith.addf %200, %201 : vector<4x8x8xf32>
    %c0_i32 = arith.constant 0 : i32
    %c15_i32 = arith.constant 15 : i32
    %203 = arith.sitofp %c0_i32 : i32 to f32
    %204 = vector.broadcast %203 : f32 to vector<4x8x8xf32>
    %205 = arith.maximumf %204, %202 : vector<4x8x8xf32>
    %206 = arith.sitofp %c15_i32 : i32 to f32
    %207 = vector.broadcast %206 : f32 to vector<4x8x8xf32>
    %208 = arith.minimumf %207, %205 : vector<4x8x8xf32>
    %209 = math.roundeven %208 : vector<4x8x8xf32>
    %210 = vector.broadcast %13 : f32 to vector<4x8x8xf32>
    %211 = arith.subf %209, %210 : vector<4x8x8xf32>
    %212 = arith.truncf %211 : vector<4x8x8xf32> to vector<4x8x8xbf16>
    %213 = arith.truncf %183 : vector<4x8x8xf32> to vector<4x8x8xbf16>
    "tpu.trace_start"() <{level = 10 : i32, message = "hqk,hkd->hqd"}> : () -> ()
    %cst_45 = arith.constant dense<0.000000e+00> : vector<4x8x8xf32>
    %214 = tpu.matmul %212, %213, %cst_45 {dimension_numbers = #tpu.dot_dimension_numbers<[2], [1], [1], [2], [0, 0, 0, 1, 1, 2], [0], [0]>} : vector<4x8x8xbf16>, vector<4x8x8xbf16>, vector<4x8x8xf32> -> vector<4x8x8xf32>
    "tpu.trace_stop"() : () -> ()
    %215 = vector.extract_strided_slice %214 {offsets = [0, 0, 0], sizes = [1, 8, 8], strides = [1, 1, 1]} : vector<4x8x8xf32> to vector<1x8x8xf32>
    %216 = vector.shape_cast %215 : vector<1x8x8xf32> to vector<8x8xf32>
    %217 = vector.extract_strided_slice %214 {offsets = [1, 0, 0], sizes = [1, 8, 8], strides = [1, 1, 1]} : vector<4x8x8xf32> to vector<1x8x8xf32>
    %218 = vector.shape_cast %217 : vector<1x8x8xf32> to vector<8x8xf32>
    %219 = vector.extract_strided_slice %214 {offsets = [2, 0, 0], sizes = [1, 8, 8], strides = [1, 1, 1]} : vector<4x8x8xf32> to vector<1x8x8xf32>
    %220 = vector.shape_cast %219 : vector<1x8x8xf32> to vector<8x8xf32>
    %221 = vector.extract_strided_slice %214 {offsets = [3, 0, 0], sizes = [1, 8, 8], strides = [1, 1, 1]} : vector<4x8x8xf32> to vector<1x8x8xf32>
    %222 = vector.shape_cast %221 : vector<1x8x8xf32> to vector<8x8xf32>
    %223 = tpu.concatenate %216, %218, %220, %222 in 1 : vector<8x8xf32>, vector<8x8xf32>, vector<8x8xf32>, vector<8x8xf32> -> vector<8x32xf32>
    %224 = vector.broadcast %14 : f32 to vector<8x32xf32>
    %225 = arith.mulf %223, %224 : vector<8x32xf32>
    %226 = vector.broadcast %15 : f32 to vector<8x32xf32>
    %227 = arith.addf %225, %226 : vector<8x32xf32>
    %c-8_i32_46 = arith.constant -8 : i32
    %c7_i32_47 = arith.constant 7 : i32
    %228 = arith.sitofp %c-8_i32_46 : i32 to f32
    %229 = vector.broadcast %228 : f32 to vector<8x32xf32>
    %230 = arith.maximumf %229, %227 : vector<8x32xf32>
    %231 = arith.sitofp %c7_i32_47 : i32 to f32
    %232 = vector.broadcast %231 : f32 to vector<8x32xf32>
    %233 = arith.minimumf %232, %230 : vector<8x32xf32>
    %234 = math.roundeven %233 : vector<8x32xf32>
    %235 = arith.truncf %234 : vector<8x32xf32> to vector<8x32xbf16>
    %c0_48 = arith.constant 0 : index
    %c0_49 = arith.constant 0 : index
    %236 = vector.load %arg12[%c0_48, %c0_49] : memref<32x32xbf16, #tpu.memory_space<vmem>>, vector<32x32xbf16>
    %cst_50 = arith.constant dense<0.000000e+00> : vector<8x32xf32>
    %237 = tpu.matmul %235, %236, %cst_50 {dimension_numbers = #tpu.dot_dimension_numbers<[1], [0], [0], [1], [0, 0, 1, 1], [], []>} : vector<8x32xbf16>, vector<32x32xbf16>, vector<8x32xf32> -> vector<8x32xf32>
    %c0_51 = arith.constant 0 : index
    %c0_52 = arith.constant 0 : index
    %238 = vector.load %arg13[%c0_51, %c0_52] : memref<1x32xf32, #tpu.memory_space<vmem>>, vector<1x32xf32>
    %239 = vector.broadcast %238 : vector<1x32xf32> to vector<8x32xf32>
    %240 = arith.mulf %237, %239 : vector<8x32xf32>
    %c0_53 = arith.constant 0 : index
    %c0_54 = arith.constant 0 : index
    %241 = vector.load %arg14[%c0_53, %c0_54] : memref<1x32xf32, #tpu.memory_space<vmem>>, vector<1x32xf32>
    %242 = vector.broadcast %241 : vector<1x32xf32> to vector<8x32xf32>
    %243 = arith.addf %240, %242 : vector<8x32xf32>
    %244 = arith.addf %1, %243 : vector<8x32xf32>
    %c0_55 = arith.constant 0 : index
    %c0_56 = arith.constant 0 : index
    %245 = vector.load %arg15[%c0_55, %c0_56] : memref<1x32xf32, #tpu.memory_space<vmem>>, vector<1x32xf32>
    %246 = vector.shape_cast %245 : vector<1x32xf32> to vector<32xf32>
    %c0_57 = arith.constant 0 : index
    %c0_58 = arith.constant 0 : index
    %247 = vector.load %arg16[%c0_57, %c0_58] : memref<1x32xf32, #tpu.memory_space<vmem>>, vector<1x32xf32>
    %248 = vector.shape_cast %247 : vector<1x32xf32> to vector<32xf32>
    %cst_59 = arith.constant dense<0.000000e+00> : vector<8xf32>
    %249 = vector.multi_reduction <add>, %244, %cst_59 [1] : vector<8x32xf32> to vector<8xf32>
    %250 = vector.shape_cast %249 : vector<8xf32> to vector<8x1xf32>
    %cst_60 = arith.constant 3.200000e+01 : f32
    %251 = vector.broadcast %cst_60 : f32 to vector<8x1xf32>
    %252 = arith.divf %250, %251 : vector<8x1xf32>
    %253 = vector.broadcast %252 : vector<8x1xf32> to vector<8x32xf32>
    %254 = arith.subf %244, %253 : vector<8x32xf32>
    %255 = arith.mulf %254, %254 : vector<8x32xf32>
    %cst_61 = arith.constant dense<0.000000e+00> : vector<8xf32>
    %256 = vector.multi_reduction <add>, %255, %cst_61 [1] : vector<8x32xf32> to vector<8xf32>
    %257 = vector.shape_cast %256 : vector<8xf32> to vector<8x1xf32>
    %cst_62 = arith.constant 3.200000e+01 : f32
    %258 = vector.broadcast %cst_62 : f32 to vector<8x1xf32>
    %259 = arith.divf %257, %258 : vector<8x1xf32>
    %260 = vector.broadcast %252 : vector<8x1xf32> to vector<8x32xf32>
    %261 = arith.subf %244, %260 : vector<8x32xf32>
    %cst_63 = arith.constant 9.99999974E-6 : f32
    %262 = vector.broadcast %cst_63 : f32 to vector<8x1xf32>
    %263 = arith.addf %259, %262 : vector<8x1xf32>
    %264 = math.rsqrt %263 : vector<8x1xf32>
    %265 = vector.broadcast %264 : vector<8x1xf32> to vector<8x32xf32>
    %266 = arith.mulf %261, %265 : vector<8x32xf32>
    %267 = vector.shape_cast %246 : vector<32xf32> to vector<1x32xf32>
    %268 = vector.broadcast %267 : vector<1x32xf32> to vector<8x32xf32>
    %269 = arith.mulf %266, %268 : vector<8x32xf32>
    %270 = vector.shape_cast %248 : vector<32xf32> to vector<1x32xf32>
    %271 = vector.broadcast %270 : vector<1x32xf32> to vector<8x32xf32>
    %272 = arith.addf %269, %271 : vector<8x32xf32>
    %273 = vector.broadcast %16 : f32 to vector<8x32xf32>
    %274 = arith.mulf %272, %273 : vector<8x32xf32>
    %275 = vector.broadcast %17 : f32 to vector<8x32xf32>
    %276 = arith.addf %274, %275 : vector<8x32xf32>
    %c-8_i32_64 = arith.constant -8 : i32
    %c7_i32_65 = arith.constant 7 : i32
    %277 = arith.sitofp %c-8_i32_64 : i32 to f32
    %278 = vector.broadcast %277 : f32 to vector<8x32xf32>
    %279 = arith.maximumf %278, %276 : vector<8x32xf32>
    %280 = arith.sitofp %c7_i32_65 : i32 to f32
    %281 = vector.broadcast %280 : f32 to vector<8x32xf32>
    %282 = arith.minimumf %281, %279 : vector<8x32xf32>
    %283 = math.roundeven %282 : vector<8x32xf32>
    %284 = arith.truncf %283 : vector<8x32xf32> to vector<8x32xbf16>
    %c0_66 = arith.constant 0 : index
    %c0_67 = arith.constant 0 : index
    %285 = vector.load %arg17[%c0_66, %c0_67] : memref<32x128xbf16, #tpu.memory_space<vmem>>, vector<32x128xbf16>
    %cst_68 = arith.constant dense<0.000000e+00> : vector<8x128xf32>
    %286 = tpu.matmul %284, %285, %cst_68 {dimension_numbers = #tpu.dot_dimension_numbers<[1], [0], [0], [1], [0, 0, 1, 1], [], []>} : vector<8x32xbf16>, vector<32x128xbf16>, vector<8x128xf32> -> vector<8x128xf32>
    %c0_69 = arith.constant 0 : index
    %c0_70 = arith.constant 0 : index
    %287 = vector.load %arg18[%c0_69, %c0_70] : memref<1x128xf32, #tpu.memory_space<vmem>>, vector<1x128xf32>
    %288 = vector.broadcast %287 : vector<1x128xf32> to vector<8x128xf32>
    %289 = arith.mulf %286, %288 : vector<8x128xf32>
    %c0_71 = arith.constant 0 : index
    %c0_72 = arith.constant 0 : index
    %290 = vector.load %arg19[%c0_71, %c0_72] : memref<1x128xf32, #tpu.memory_space<vmem>>, vector<1x128xf32>
    %291 = vector.broadcast %290 : vector<1x128xf32> to vector<8x128xf32>
    %292 = arith.addf %289, %291 : vector<8x128xf32>
    %cst_73 = arith.constant 5.000000e-01 : f32
    %293 = vector.broadcast %cst_73 : f32 to vector<8x128xf32>
    %294 = arith.mulf %293, %292 : vector<8x128xf32>
    %cst_74 = arith.constant 4.471500e-02 : f32
    %295 = vector.broadcast %cst_74 : f32 to vector<8x128xf32>
    %296 = arith.mulf %295, %292 : vector<8x128xf32>
    %297 = arith.mulf %296, %292 : vector<8x128xf32>
    %298 = arith.mulf %297, %292 : vector<8x128xf32>
    %299 = arith.addf %292, %298 : vector<8x128xf32>
    %cst_75 = arith.constant 0.797884583 : f32
    %300 = vector.broadcast %cst_75 : f32 to vector<8x128xf32>
    %301 = arith.mulf %300, %299 : vector<8x128xf32>
    %302 = math.tanh %301 : vector<8x128xf32>
    %cst_76 = arith.constant 1.000000e+00 : f32
    %303 = vector.broadcast %cst_76 : f32 to vector<8x128xf32>
    %304 = arith.addf %303, %302 : vector<8x128xf32>
    %305 = arith.mulf %294, %304 : vector<8x128xf32>
    %306 = vector.broadcast %18 : f32 to vector<8x128xf32>
    %307 = arith.mulf %305, %306 : vector<8x128xf32>
    %308 = vector.broadcast %19 : f32 to vector<8x128xf32>
    %309 = arith.addf %307, %308 : vector<8x128xf32>
    %c-8_i32_77 = arith.constant -8 : i32
    %c7_i32_78 = arith.constant 7 : i32
    %310 = arith.sitofp %c-8_i32_77 : i32 to f32
    %311 = vector.broadcast %310 : f32 to vector<8x128xf32>
    %312 = arith.maximumf %311, %309 : vector<8x128xf32>
    %313 = arith.sitofp %c7_i32_78 : i32 to f32
    %314 = vector.broadcast %313 : f32 to vector<8x128xf32>
    %315 = arith.minimumf %314, %312 : vector<8x128xf32>
    %316 = math.roundeven %315 : vector<8x128xf32>
    %317 = arith.truncf %316 : vector<8x128xf32> to vector<8x128xbf16>
    %c0_79 = arith.constant 0 : index
    %c0_80 = arith.constant 0 : index
    %318 = vector.load %arg20[%c0_79, %c0_80] : memref<128x32xbf16, #tpu.memory_space<vmem>>, vector<128x32xbf16>
    %cst_81 = arith.constant dense<0.000000e+00> : vector<8x32xf32>
    %319 = tpu.matmul %317, %318, %cst_81 {dimension_numbers = #tpu.dot_dimension_numbers<[1], [0], [0], [1], [0, 0, 1, 1], [], []>} : vector<8x128xbf16>, vector<128x32xbf16>, vector<8x32xf32> -> vector<8x32xf32>
    %c0_82 = arith.constant 0 : index
    %c0_83 = arith.constant 0 : index
    %320 = vector.load %arg21[%c0_82, %c0_83] : memref<1x32xf32, #tpu.memory_space<vmem>>, vector<1x32xf32>
    %321 = vector.broadcast %320 : vector<1x32xf32> to vector<8x32xf32>
    %322 = arith.mulf %319, %321 : vector<8x32xf32>
    %c0_84 = arith.constant 0 : index
    %c0_85 = arith.constant 0 : index
    %323 = vector.load %arg22[%c0_84, %c0_85] : memref<1x32xf32, #tpu.memory_space<vmem>>, vector<1x32xf32>
    %324 = vector.broadcast %323 : vector<1x32xf32> to vector<8x32xf32>
    %325 = arith.addf %322, %324 : vector<8x32xf32>
    %326 = arith.addf %244, %325 : vector<8x32xf32>
    %c0_86 = arith.constant 0 : index
    %c0_87 = arith.constant 0 : index
    %c0_88 = arith.constant 0 : index
    %327 = vector.load %arg23[%c0_86, %c0_87, %c0_88] : memref<1x8x32xf32, #tpu.memory_space<vmem>>, vector<1x8x32xf32>
    %328 = vector.shape_cast %327 : vector<1x8x32xf32> to vector<8x32xf32>
    %329 = vector.shape_cast %326 : vector<8x32xf32> to vector<1x8x32xf32>
    tpu.vector_store %arg23[%c0_86, %c0_87, %c0_88], %329 {strides = array<i32>} : memref<1x8x32xf32, #tpu.memory_space<vmem>>, vector<1x8x32xf32>,
    return
  }
  func.func @transform_0(%arg0: i32) -> i32 {
    %c0_i32 = arith.constant 0 : i32
    %c0_i32_0 = arith.constant 0 : i32
    return %c0_i32 : i32
  }
  func.func @transform_1(%arg0: i32) -> (i32, i32, i32) {
    %c0_i32 = arith.constant 0 : i32
    %c0_i32_0 = arith.constant 0 : i32
    %c0_i32_1 = arith.constant 0 : i32
    return %arg0, %c0_i32, %c0_i32_0 : i32, i32, i32
  }
  func.func @transform_2(%arg0: i32) -> (i32, i32) {
    %c0_i32 = arith.constant 0 : i32
    %c0_i32_0 = arith.constant 0 : i32
    %c0_i32_1 = arith.constant 0 : i32
    return %c0_i32, %c0_i32_0 : i32, i32
  }
  func.func @transform_3(%arg0: i32) -> (i32, i32) {
    %c0_i32 = arith.constant 0 : i32
    %c0_i32_0 = arith.constant 0 : i32
    %c0_i32_1 = arith.constant 0 : i32
    return %c0_i32, %c0_i32_0 : i32, i32
  }
  func.func @transform_4(%arg0: i32) -> (i32, i32) {
    %c0_i32 = arith.constant 0 : i32
    %c0_i32_0 = arith.constant 0 : i32
    %c0_i32_1 = arith.constant 0 : i32
    return %c0_i32, %c0_i32_0 : i32, i32
  }
  func.func @transform_5(%arg0: i32) -> (i32, i32) {
    %c0_i32 = arith.constant 0 : i32
    %c0_i32_0 = arith.constant 0 : i32
    %c0_i32_1 = arith.constant 0 : i32
    return %c0_i32, %c0_i32_0 : i32, i32
  }
  func.func @transform_6(%arg0: i32) -> (i32, i32) {
    %c0_i32 = arith.constant 0 : i32
    %c0_i32_0 = arith.constant 0 : i32
    %c0_i32_1 = arith.constant 0 : i32
    return %c0_i32, %c0_i32_0 : i32, i32
  }
  func.func @transform_7(%arg0: i32) -> (i32, i32) {
    %c0_i32 = arith.constant 0 : i32
    %c0_i32_0 = arith.constant 0 : i32
    %c0_i32_1 = arith.constant 0 : i32
    return %c0_i32, %c0_i32_0 : i32, i32
  }
  func.func @transform_8(%arg0: i32) -> (i32, i32) {
    %c0_i32 = arith.constant 0 : i32
    %c0_i32_0 = arith.constant 0 : i32
    %c0_i32_1 = arith.constant 0 : i32
    return %c0_i32, %c0_i32_0 : i32, i32
  }
  func.func @transform_9(%arg0: i32) -> (i32, i32) {
    %c0_i32 = arith.constant 0 : i32
    %c0_i32_0 = arith.constant 0 : i32
    %c0_i32_1 = arith.constant 0 : i32
    return %c0_i32, %c0_i32_0 : i32, i32
  }
  func.func @transform_10(%arg0: i32) -> (i32, i32) {
    %c0_i32 = arith.constant 0 : i32
    %c0_i32_0 = arith.constant 0 : i32
    %c0_i32_1 = arith.constant 0 : i32
    return %c0_i32, %c0_i32_0 : i32, i32
  }
  func.func @transform_11(%arg0: i32) -> (i32, i32) {
    %c0_i32 = arith.constant 0 : i32
    %c0_i32_0 = arith.constant 0 : i32
    %c0_i32_1 = arith.constant 0 : i32
    return %c0_i32, %c0_i32_0 : i32, i32
  }
  func.func @transform_12(%arg0: i32) -> (i32, i32) {
    %c0_i32 = arith.constant 0 : i32
    %c0_i32_0 = arith.constant 0 : i32
    %c0_i32_1 = arith.constant 0 : i32
    return %c0_i32, %c0_i32_0 : i32, i32
  }
  func.func @transform_13(%arg0: i32) -> (i32, i32) {
    %c0_i32 = arith.constant 0 : i32
    %c0_i32_0 = arith.constant 0 : i32
    %c0_i32_1 = arith.constant 0 : i32
    return %c0_i32, %c0_i32_0 : i32, i32
  }
  func.func @transform_14(%arg0: i32) -> (i32, i32) {
    %c0_i32 = arith.constant 0 : i32
    %c0_i32_0 = arith.constant 0 : i32
    %c0_i32_1 = arith.constant 0 : i32
    return %c0_i32, %c0_i32_0 : i32, i32
  }
  func.func @transform_15(%arg0: i32) -> (i32, i32) {
    %c0_i32 = arith.constant 0 : i32
    %c0_i32_0 = arith.constant 0 : i32
    %c0_i32_1 = arith.constant 0 : i32
    return %c0_i32, %c0_i32_0 : i32, i32
  }
  func.func @transform_16(%arg0: i32) -> (i32, i32) {
    %c0_i32 = arith.constant 0 : i32
    %c0_i32_0 = arith.constant 0 : i32
    %c0_i32_1 = arith.constant 0 : i32
    return %c0_i32, %c0_i32_0 : i32, i32
  }
  func.func @transform_17(%arg0: i32) -> (i32, i32) {
    %c0_i32 = arith.constant 0 : i32
    %c0_i32_0 = arith.constant 0 : i32
    %c0_i32_1 = arith.constant 0 : i32
    return %c0_i32, %c0_i32_0 : i32, i32
  }
  func.func @transform_18(%arg0: i32) -> (i32, i32) {
    %c0_i32 = arith.constant 0 : i32
    %c0_i32_0 = arith.constant 0 : i32
    %c0_i32_1 = arith.constant 0 : i32
    return %c0_i32, %c0_i32_0 : i32, i32
  }
  func.func @transform_19(%arg0: i32) -> (i32, i32) {
    %c0_i32 = arith.constant 0 : i32
    %c0_i32_0 = arith.constant 0 : i32
    %c0_i32_1 = arith.constant 0 : i32
    return %c0_i32, %c0_i32_0 : i32, i32
  }
  func.func @transform_20(%arg0: i32) -> (i32, i32) {
    %c0_i32 = arith.constant 0 : i32
    %c0_i32_0 = arith.constant 0 : i32
    %c0_i32_1 = arith.constant 0 : i32
    return %c0_i32, %c0_i32_0 : i32, i32
  }
  func.func @transform_21(%arg0: i32) -> (i32, i32) {
    %c0_i32 = arith.constant 0 : i32
    %c0_i32_0 = arith.constant 0 : i32
    %c0_i32_1 = arith.constant 0 : i32
    return %c0_i32, %c0_i32_0 : i32, i32
  }
  func.func @transform_22(%arg0: i32) -> (i32, i32, i32) {
    %c0_i32 = arith.constant 0 : i32
    %c0_i32_0 = arith.constant 0 : i32
    %c0_i32_1 = arith.constant 0 : i32
    return %arg0, %c0_i32, %c0_i32_0 : i32, i32, i32
  }
}

</mosaic_0001>

<bundles_post_ra>
// kernel: q_block_forward.1
= control target key start
LH: loop header
LB: loop body
LE: loop exit
PB: predicated region body
PF: predicated region fallthrough
CT: control target
= control target key end

     0   :  { %s3090_s0 = inlined_call_operand.vmem [shape: f32[18], index: 0, kind: input, shape index: {}]   ;;  %s3091_s1 = inlined_call_operand.vmem [shape: f32[2,8,32], index: 1, kind: input, shape index: {}]   ;;  %s3092_s2 = inlined_call_operand.vmem [shape: f32[1,32], index: 2, kind: input, shape index: {}]   ;;  %s3093_s3 = inlined_call_operand.vmem [shape: f32[1,32], index: 3, kind: input, shape index: {}]   ;;  %s3094_s4 = inlined_call_operand.vmem [shape: bf16[32,96], index: 4, kind: input, shape index: {}]   ;;  %s3095_s5 = inlined_call_operand.vmem [shape: f32[1,96], index: 5, kind: input, shape index: {}]   ;;  %s3096_s6 = inlined_call_operand.vmem [shape: f32[1,96], index: 6, kind: input, shape index: {}]   ;;  %s3097_s7 = inlined_call_operand.vmem [shape: f32[1,8], index: 7, kind: input, shape index: {}]   ;;  %s3098_s8 = inlined_call_operand.vmem [shape: f32[1,8], index: 8, kind: input, shape index: {}]   ;;  %s3099_s9 = inlined_call_operand.vmem [shape: f32[1,8], index: 9, kind: input, shape index: {}]   ;;  %s3100_s10 = inlined_call_operand.vmem [shape: f32[1,8], index: 10, kind: input, shape index: {}]   ;;  %s3101_s11 = inlined_call_operand.vmem [shape: bf16[32,32], index: 11, kind: input, shape index: {}]   ;;  %s3102_s12 = inlined_call_operand.vmem [shape: f32[1,32], index: 12, kind: input, shape index: {}]   ;;  %s3103_s13 = inlined_call_operand.vmem [shape: f32[1,32], index: 13, kind: input, shape index: {}]   ;;  %s3104_s14 = inlined_call_operand.vmem [shape: f32[1,32], index: 14, kind: input, shape index: {}]   ;;  %s3105_s15 = inlined_call_operand.vmem [shape: f32[1,32], index: 15, kind: input, shape index: {}]   ;;  %s3106_s16 = inlined_call_operand.vmem [shape: bf16[32,128], index: 16, kind: input, shape index: {}]   ;;  %s3107_s17 = inlined_call_operand.vmem [shape: f32[1,128], index: 17, kind: input, shape index: {}]   ;;  %s3108_s18 = inlined_call_operand.vmem [shape: f32[1,128], index: 18, kind: input, shape index: {}]   ;;  %s3109_s19 = inlined_call_operand.vmem [shape: bf16[128,32], index: 19, kind: input, shape index: {}]   ;;  %s3110_s20 = inlined_call_operand.vmem [shape: f32[1,32], index: 20, kind: input, shape index: {}]   ;;  %s3111_s21 = inlined_call_operand.vmem [shape: f32[1,32], index: 21, kind: input, shape index: {}]   ;;  %s3112_s22 = inlined_call_operand.hbm [shape: f32[2,8,32], index: 22, kind: output, shape index: {}]  }
   0x1   :  { %3119 = sst [smem:[#allocation12_spill]] %s3090_s0 }
   0x2   :  { %3120 = sst [smem:[#allocation13_spill]] %s3091_s1 }
   0x3   :  { %3121 = sst [smem:[#allocation14_spill]] %s3092_s2 }
   0x4   :  { %3122 = sst [smem:[#allocation15_spill]] %s3093_s3 }
   0x5   :  { %3123 = sst [smem:[#allocation16_spill]] %s3094_s4 }
   0x6   :  { %3124 = sst [smem:[#allocation17_spill]] %s3095_s5 }
   0x7   :  { %3125 = sst [smem:[#allocation18_spill]] %s3096_s6 }
   0x8   :  { %3126 = sst [smem:[#allocation19_spill]] %s3097_s7 }
   0x9   :  { %27 = vsyncpa [#allocation4], 0 }
   0xa   :  { %28 = vsyncpa [#allocation3], 0 }
   0xb   :  { %30 = vsyncpa [#allocation3 + $0x1], 0  ;;  %s2686_s3 = smov 0   ;;  %s2688_s28 = smov 0  }
   0xc   :  { %s2690_s29 = smov 0   ;;  %s2692_s30 = smov 0  }
   0xd LB: > { %3127 = sst [smem:[#allocation8_spill]] %s2552_s29  ;;  %s2707_s4 = sadd.s32 4294967295, %s2556_s30   ;;  %s2556_s30 = sphi %s2692_s30, %s3143_s30   ;;  %s2552_s29 = sphi %s2690_s29, %s3145_s29   ;;  %s2548_s28 = sphi %s2688_s28, %s3147_s28   ;;  %s2544_s3 = sphi %s2686_s3, %s3146_s3  }
   0xe   : > { %s2007_s0 = sadd.s32 4294967294, %s2556_s30   ;;  %s2711_s23 = sadd.s32 1, %s2556_s30  }
   0xf   : > { %3128 = sst [smem:[#allocation9_spill]] %s2711_s23  ;;  %s510_s1 = sadd.s32 1, %s2552_s29 }
  0x10   : > { %s507_s5 = ssub.s32 %s2556_s30, %s2711_s23  ;;  %p520_p0 = scmp.ne.s32.totalorder %s2552_s29, %s2548_s28 }
  0x11   : > { %p508_p1 = scmp.eq.s32.totalorder %s507_s5, 0  ;;  %p521_p2 = scmp.eq.s32.totalorder %s2707_s4, 1 }
  0x12   : > { %p526_p3 = scmp.ne.s32.totalorder %s2548_s28, %s2544_s3  ;;  %p527_p4 = scmp.eq.s32.totalorder %s2007_s0, 1 }
  0x13   : > { %s2722_s24 = scalar_select %p508_p1, %s2552_s29, %s510_s1  }
  0x14   : > { %p2724_p5 = por %p521_p2, %p520_p0  ;;  %p2728_p6 = por %p527_p4, %p526_p3 }
  0x15   : > { %3129 = sst [smem:[#allocation10_spill]] %s2722_s24  ;;  %p2008_p7 = scmp.ge.s32.totalorder %s2556_s30, 1 }
  0x16   : > { %s3131_s25 = scalar_select %p2728_p6, 1, 0 }
  0x17   : > { %p534_p8 = scmp.lt.s32.totalorder %s2556_s30, 3  ;;  %p2377_p9 = scmp.eq.s32.totalorder %s2707_s4, 0 }
  0x18   : > { %3132 = sst [smem:[#allocation11_spill]] %s3131_s25 }
  0x19   : > { %p2735_p10 = pnand %p2008_p7, %p534_p8  ;;  %s3134_s0 = sld [smem:[#allocation12_spill]] }
  0x1b   : > { %p2369_p11 = pneg %p2735_p10 }
  0x1d   : > { %p2370_p12 = pnand %p2377_p9, %p2369_p11 }
  0x1f   : > { %s547_s1 = sshll.u32 %s3134_s0, 4  ;;  %p2479_p0 = pneg %p2370_p12  ;;  %s548_s1 = int_to_ptr.vmem [resolvable:$true] %s547_s1 }
  0x20   : > { %s2477_s5 = scalar_lea.vmem %s548_s1, 16  ;;  %p2485_p3 = scmp.lt.s32.totalorder %s548_s1, %s548_s1 }
  0x21   : > { %p2478_p13 = scmp.ne.s32.totalorder %s548_s1, %s2477_s5  ;;  %p2486_p4 = scmp.lt.s32.totalorder %s2477_s5, %s2477_s5 }
  0x23   : > { %p2480_p1 = pnand %p2479_p0, %p2478_p13  ;;  %p2487_p7 = por %p2486_p4, %p2485_p3 }
  0x25   : > { %p2481_p2 = pneg %p2480_p1 }
  0x27   : > { %p2488_p8 = pnand %p2487_p7, %p2481_p2 }
  0x29   : > { %2491 = shalt.err (!%p2488_p8)
}
  0x2a   : > { %s2558_s24 = smov [#allocation2]   ;;  %627 = sbr.rel (%p2735_p10) target bundleno = 3223 (0xc97), region = 108 }
  0x2b   : > { %2372 = dma.vmem_to_smem (!%p2370_p12), %s548_s1, 16, %s2558_s24, [#allocation4]  }
  0x2f   : > { %2535 = dma.done.wait (%p2377_p9), [#allocation4], 16  }
  0x30   : > { %2537 = vsyncadd (%p2377_p9), [#allocation4], 4294967280 }
  0x31   : > { %633 = sfence }
  0x32   : > { %p689_p11 = scmp.lt.s32.totalorder %s2707_s4, 1  ;;  %vm715_vm0 = vcmask 261120   ;;  %s3135_s29 = sld [smem:[#allocation13_spill]]  ;;  %v2559_v8 = vmov 0.0   ;;  %vm2560_vm1 = vmmov 0   ;;  %vm839_vm3 = vcmask 64512  }
  0x33   : > { %2111 = vmatprep.subr.bf16.mxu0 %v2559_v8  ;;  %2115 = vmatprep.mubr.msk.bf16.mxu0 %vm2560_vm1, %v2559_v8  ;;  %s695_s0 = sld [smem:[#allocation2]]  ;;  %s2563_s25 = smov 112  }
  0x34   : > { %s690_s2 = scalar_select %p689_p11, %s2707_s4, 1  ;;  %2131 = vmatprep.subr.bf16.mxu1 %v2559_v8  ;;  %2133 = vmatprep.mubr.msk.bf16.mxu1 %vm2560_vm1, %v2559_v8 }
  0x35   : > { %s2015_s5 = sld [smem:[#allocation2 + $0x1]] }
  0x36   : > { %s2014_s27 = sshll.u32 %s690_s2, 3  ;;  %s3136_s2 = sld [smem:[#allocation16_spill]] }
  0x37   : > { %s3138_s23 = sld [smem:[#allocation15_spill]] }
  0x38   : > { %s2757_s24 = scalar_lea.vmem %s3135_s29, %s2014_s27  ;;  %s3137_s29 = sld [smem:[#allocation14_spill]] }
  0x39   : > { %v694_v0 = vld [vmem:[%s2757_s24] sm:$0xff]  ;;  %v744_v18 = vstv %s695_s0  ;;  %s3139_s0 = sld [smem:[#allocation17_spill]]  ;;  %s2562_s27 = smov 120  }
  0x3a   : > { %v716_v1 = vsel %vm715_vm0, %v694_v0, 0.0  ;;  %s3140_s1 = sld [smem:[#allocation18_spill]] }
  0x3b   : > { %717 = vadd.xlane.f32.xlu0 %v716_v1  ;;  %v746_v20 = vstv %s2015_s5  ;;  %s3141_s7 = sld [smem:[#allocation19_spill]] }
  0x3c   : > { %v2424_v7 = vld [vmem:[%s3136_s2 + $0x8] sm:$0xff]   ;;  %v2425_v9 = vld [vmem:[%s3136_s2] sm:$0xff]   ;;  %s2017_s5 = sld [smem:[#allocation2 + $0x3]] }
  0x3d   : > { %2112 = vmatpush3.bf16.msra.mxu0 %v2424_v7  ;;  %v2033_v16 = vld [vmem:[%s3138_s23] ss:$0 sm:$0xff]  ;;  %s2564_s23 = smov 96   ;;  %s2022_s26 = sld [smem:[#allocation2 + $0x8]] }
  0x3e   : > { %2113 = vmatprep.subr.bf16.mxu0 %v2559_v8  ;;  %v2032_v14 = vld [vmem:[%s3137_s29] ss:$0 sm:$0xff]  ;;  %s2561_s29 = smov 104   ;;  %s2025_s2 = sld [smem:[#allocation2 + $0xb]] }
  0x3f   : > { %v2037_v33 = vld [vmem:[%s3139_s0] ss:$0 sm:$0xff]  ;;  %s2565_s0 = smov 32  }
  0x40   : > { %v2038_v35 = vld [vmem:[%s3140_s1] ss:$0 sm:$0xff]  ;;  %s2018_s1 = sld [smem:[#allocation2 + $0x4]] }
  0x41   : > { %2114 = vmatpush3.bf16.msra.mxu0 %v2425_v9 }
  0x42   : > { %2119 = vmatprep.subr.bf16.mxu0 %v2559_v8 }
  0xc4   : > { %v718_v2 = vpop.xlane.xlu0 %717 }
  0xc5   : > { %v720_v3 = vmul.f32 0.03125, %v718_v2 }
  0xc7   : > { %v721_v4 = vsub.f32 %v694_v0, %v720_v3 }
  0xc9   : > { %v722_v5 = vmul.f32 %v721_v4, %v721_v4 }
  0xcb   : > { %v723_v6 = vsel %vm715_vm0, %v722_v5, 0.0 }
  0xcc   : > { %724 = vadd.xlane.f32.xlu0 %v723_v6 }
 0x155   : > { %v725_v10 = vpop.xlane.xlu0 %724 }
 0x156   : > { %v726_v11 = vmul.f32 0.03125, %v725_v10 }
 0x158   : > { %v727_v12 = vadd.f32 1e-05, %v726_v11 }
 0x15a   : > { %2438 = vrsqrt.f32 %v727_v12 }
 0x167   : > { %v2439_v13 = vpop.eup %2438 }
 0x168   : > { %v729_v15 = vmul.f32 %v2439_v13, %v721_v4 }
 0x16a   : > { %v736_v17 = vmul.f32 %v2032_v14, %v729_v15 }
 0x16c   : > { %v743_v19 = vadd.f32 %v2033_v16, %v736_v17  ;;  %v2041_v17 = vld [vmem:[%s3099_s9] ss:$0 sm:$0xff] }
 0x16e   : > { %v745_v21 = vmul.f32 %v744_v18, %v743_v19  ;;  %v2042_v18 = vld [vmem:[%s3100_s10] ss:$0 sm:$0xff] }
 0x170   : > { %v747_v22 = vadd.f32 %v746_v20, %v745_v21 }
 0x172   : > { %v748_v23 = vmax.f32 %v747_v22, -8.0 }
 0x174   : > { %v749_v24 = vmin.f32 %v748_v23, 7.0 }
 0x176   : > { %v2205_v25 = vcvt.f32.s32 %v749_v24  ;;  %v2203_v27 = vand.u32 2147483647, %v749_v24  ;;  %v2208_v29 = vand.u32 2147483648, %v749_v24 }
 0x178   : > { %v2206_v26 = vcvt.s32.f32 %v2205_v25  ;;  %vm2204_vm2 = vcmp.lt.f32.partialorder %v2203_v27, 8388608.0 }
 0x17a   : > { %v2207_v28 = vand.u32 2147483647, %v2206_v26 }
 0x17c   : > { %v2209_v30 = vor.u32 %v2208_v29, %v2207_v28 }
 0x17e   : > { %v2210_v31 = vsel %vm2204_vm2, %v2209_v30, %v749_v24  ;;  %vm1379_vm2 = vcmask 1043456  }
 0x17f   : > { %v751_v32 = vpack.c.bf16 %v2210_v31, %v2210_v31 }
 0x181   : > { %2116 = vmatmul.mubr.msk.bf16.vlgmr.msra.gmra.mxu0 %vm715_vm0, %v751_v32 }
 0x182   : > { %2121 = vmatprep.mubr.msk.bf16.mxu0 %vm2560_vm1, %v2559_v8 }
 0x241   : > { %v805_v34 = vpop.f32.mrf.mxu0 }
 0x242   : > { %v818_v36 = vmul.f32 %v2037_v33, %v805_v34 }
 0x243   : > { %v2117_v37 = vpop.f32.mrf.mxu0 }
 0x244   : > { %v2791_v38 = vadd.f32 %v2038_v35, %v818_v36 }
 0x245   : > { %v808_v39 = vpop.f32.mrf.mxu0 }
 0x246   : > { %834 = vrot.lane.b32.xlu0 %v2791_v38, %s2561_s29  ;;  %828 = vrot.lane.b32.xlu1 %v2791_v38, %s2562_s27  ;;  %v840_v4 = vsel %vm839_vm3, %v2791_v38, 0.0  ;;  %s2019_s29 = sld [smem:[#allocation2 + $0x5]] }
 0x247   : > { %v2118_v40 = vpop.f32.mrf.mxu0  ;;  %s2016_s27 = sld [smem:[#allocation2 + $0x2]] }
 0x24a   : > { %831 = vrot.lane.b32.xlu1 %v2791_v38, %s2563_s25  ;;  %s2024_s25 = sld [smem:[#allocation2 + $0xa]] }
 0x24e   : > { %937 = vrot.lane.b32.xlu1 %v2791_v38, %s2564_s23 }
 0x2b8   : > { %v2798_v41 = vpop.permute.xlu1 %828  ;;  %v2806_v43 = vpop.permute.xlu0 %834 }
 0x2b9   : > { %939 = vrot.lane.b32.xlu1 %v2798_v41, %s2564_s23  ;;  %v843_v7 = vsel %vm839_vm3, %v2798_v41, 0.0  ;;  %v849_v10 = vsel %vm839_vm3, %v2806_v43, 0.0 }
 0x2bc   : > { %v2802_v42 = vpop.permute.xlu1 %831 }
 0x2bd   : > { %941 = vrot.lane.b32.xlu1 %v2802_v42, %s2564_s23  ;;  %v846_v5 = vsel %vm839_vm3, %v2802_v42, 0.0 }
 0x2c0   : > { %v938_v44 = vpop.permute.xlu1 %937 }
 0x2c1   : > { %943 = vrot.lane.b32.xlu1 %v2806_v43, %s2564_s23  ;;  %v949_v45 = vsel %vm839_vm3, %v938_v44, 0.0 }
 0x2e5   : > { %950 = vadd.xlane.f32.xlu1 %v949_v45 }
 0x32b   : > { %v940_v46 = vpop.permute.xlu1 %939 }
 0x32c   : > { %v952_v47 = vsel %vm839_vm3, %v940_v46, 0.0 }
 0x32d   : > { %953 = vadd.xlane.f32.xlu0 %v952_v47 }
 0x32f   : > { %v942_v48 = vpop.permute.xlu1 %941 }
 0x330   : > { %v955_v49 = vsel %vm839_vm3, %v942_v48, 0.0 }
 0x331   : > { %956 = vadd.xlane.f32.xlu1 %v955_v49 }
 0x333   : > { %v944_v50 = vpop.permute.xlu1 %943 }
 0x334   : > { %v958_v51 = vsel %vm839_vm3, %v944_v50, 0.0 }
 0x335   : > { %959 = vadd.xlane.f32.xlu0 %v958_v51 }
 0x36e   : > { %v951_v52 = vpop.xlane.xlu1 %950 }
 0x36f   : > { %v961_v53 = vmul.f32 0.125, %v951_v52 }
 0x371   : > { %v2815_v54 = vsub.f32 %v2791_v38, %v961_v53 }
 0x373   : > { %v969_v55 = vmul.f32 %v2815_v54, %v2815_v54 }
 0x375   : > { %977 = vrot.lane.b32.xlu1 %v969_v55, %s2564_s23 }
 0x3b6   : > { %v954_v56 = vpop.xlane.xlu0 %953 }
 0x3b7   : > { %v962_v57 = vmul.f32 0.125, %v954_v56 }
 0x3b9   : > { %v2821_v58 = vsub.f32 %v2798_v41, %v962_v57 }
 0x3ba   : > { %v957_v59 = vpop.xlane.xlu1 %956 }
 0x3bb   : > { %v963_v60 = vmul.f32 0.125, %v957_v59  ;;  %v970_v61 = vmul.f32 %v2821_v58, %v2821_v58 }
 0x3bd   : > { %v2826_v62 = vsub.f32 %v2802_v42, %v963_v60  ;;  %979 = vrot.lane.b32.xlu0 %v970_v61, %s2564_s23  ;;  %v1041_v61 = vstv %s2018_s1  ;;  %s2020_s1 = sld [smem:[#allocation2 + $0x6]] }
 0x3be   : > { %v960_v63 = vpop.xlane.xlu0 %959 }
 0x3bf   : > { %v964_v0 = vmul.f32 0.125, %v960_v63  ;;  %v971_v1 = vmul.f32 %v2826_v62, %v2826_v62 }
 0x3c1   : > { %v2832_v2 = vsub.f32 %v2806_v43, %v964_v0  ;;  %981 = vrot.lane.b32.xlu1 %v971_v1, %s2564_s23  ;;  %v1046_v1 = vstv %s2019_s29  ;;  %s2021_s29 = sld [smem:[#allocation2 + $0x7]] }
 0x3c3   : > { %v972_v3 = vmul.f32 %v2832_v2, %v2832_v2 }
 0x3c5   : > { %983 = vrot.lane.b32.xlu1 %v972_v3, %s2564_s23 }
 0x3dc   : > { %841 = vadd.xlane.f32.xlu0 %v840_v4 }
 0x3e0   : > { %847 = vadd.xlane.f32.xlu0 %v846_v5 }
 0x3e7   : > { %v978_v6 = vpop.permute.xlu1 %977 }
 0x3e8   : > { %v989_v9 = vsel %vm839_vm3, %v978_v6, 0.0 }
 0x3e9   : > { %844 = vadd.xlane.f32.xlu1 %v843_v7  ;;  %990 = vadd.xlane.f32.xlu0 %v989_v9 }
 0x3ed   : > { %850 = vadd.xlane.f32.xlu1 %v849_v10 }
 0x42f   : > { %v980_v11 = vpop.permute.xlu0 %979 }
 0x430   : > { %v992_v12 = vsel %vm839_vm3, %v980_v11, 0.0 }
 0x431   : > { %993 = vadd.xlane.f32.xlu0 %v992_v12 }
 0x433   : > { %v982_v13 = vpop.permute.xlu1 %981 }
 0x434   : > { %v995_v14 = vsel %vm839_vm3, %v982_v13, 0.0 }
 0x435   : > { %996 = vadd.xlane.f32.xlu1 %v995_v14 }
 0x437   : > { %v984_v15 = vpop.permute.xlu1 %983 }
 0x438   : > { %v998_v16 = vsel %vm839_vm3, %v984_v15, 0.0 }
 0x439   : > { %999 = vadd.xlane.f32.xlu0 %v998_v16 }
 0x446   : > { %1022 = vrot.lane.b32.xlu1 %v2041_v17, %s2565_s0 }
 0x44f   : > { %1034 = vrot.lane.b32.xlu0 %v2042_v18, %s2565_s0  ;;  %s2567_s0 = smov 8  }
 0x465   : > { %v842_v19 = vpop.xlane.xlu0 %841 }
 0x466   : > { %v853_v20 = vmul.f32 0.125, %v842_v19 }
 0x468   : > { %v2857_v21 = vsub.f32 %v2791_v38, %v853_v20 }
 0x469   : > { %v848_v22 = vpop.xlane.xlu0 %847 }
 0x46a   : > { %v855_v23 = vmul.f32 0.125, %v848_v22  ;;  %v861_v24 = vmul.f32 %v2857_v21, %v2857_v21 }
 0x46c   : > { %v2862_v25 = vsub.f32 %v2802_v42, %v855_v23  ;;  %v865_v26 = vsel %vm839_vm3, %v861_v24, 0.0 }
 0x46d   : > { %866 = vadd.xlane.f32.xlu1 %v865_v26 }
 0x46e   : > { %v863_v27 = vmul.f32 %v2862_v25, %v2862_v25 }
 0x470   : > { %v871_v28 = vsel %vm839_vm3, %v863_v27, 0.0 }
 0x471   : > { %872 = vadd.xlane.f32.xlu1 %v871_v28 }
 0x472   : > { %v845_v29 = vpop.xlane.xlu1 %844  ;;  %v991_v40 = vpop.xlane.xlu0 %990 }
 0x473   : > { %v854_v30 = vmul.f32 0.125, %v845_v29  ;;  %v1001_v44 = vmul.f32 0.125, %v991_v40 }
 0x475   : > { %v2869_v31 = vsub.f32 %v2798_v41, %v854_v30  ;;  %v1005_v45 = vadd.f32 1e-05, %v1001_v44 }
 0x476   : > { %v851_v32 = vpop.xlane.xlu1 %850 }
 0x477   : > { %v856_v33 = vmul.f32 0.125, %v851_v32  ;;  %v862_v34 = vmul.f32 %v2869_v31, %v2869_v31  ;;  %2440 = vrsqrt.f32 %v1005_v45 }
 0x479   : > { %v2874_v35 = vsub.f32 %v2806_v43, %v856_v33  ;;  %v868_v36 = vsel %vm839_vm3, %v862_v34, 0.0 }
 0x47a   : > { %869 = vadd.xlane.f32.xlu0 %v868_v36 }
 0x47b   : > { %v864_v37 = vmul.f32 %v2874_v35, %v2874_v35 }
 0x47d   : > { %v874_v39 = vsel %vm839_vm3, %v864_v37, 0.0 }
 0x47e   : > { %875 = vadd.xlane.f32.xlu0 %v874_v39 }
 0x484   : > { %v2441_v51 = vpop.eup %2440 }
 0x485   : > { %v1013_v56 = vmul.f32 %v2441_v51, %v2815_v54 }
 0x4ba   : > { %v994_v46 = vpop.xlane.xlu0 %993 }
 0x4bb   : > { %v1002_v47 = vmul.f32 0.125, %v994_v46 }
 0x4bd   : > { %v1006_v48 = vadd.f32 1e-05, %v1002_v47 }
 0x4be   : > { %v997_v49 = vpop.xlane.xlu1 %996 }
 0x4bf   : > { %2442 = vrsqrt.f32 %v1006_v48  ;;  %v1003_v50 = vmul.f32 0.125, %v997_v49 }
 0x4c1   : > { %v1007_v52 = vadd.f32 1e-05, %v1003_v50 }
 0x4c2   : > { %v1023_v53 = vpop.permute.xlu1 %1022  ;;  %v1000_v55 = vpop.xlane.xlu0 %999 }
 0x4c3   : > { %2444 = vrsqrt.f32 %v1007_v52  ;;  %v1004_v57 = vmul.f32 0.125, %v1000_v55  ;;  %v1025_v59 = vmul.f32 %v1023_v53, %v1013_v56 }
 0x4c5   : > { %v1008_v60 = vadd.f32 1e-05, %v1004_v57 }
 0x4c6   : > { %v1035_v63 = vpop.permute.xlu0 %1034 }
 0x4c7   : > { %2446 = vrsqrt.f32 %v1008_v60  ;;  %v1037_v0 = vadd.f32 %v1035_v63, %v1025_v59 }
 0x4c9   : > { %v1042_v3 = vmul.f32 %v1041_v61, %v1037_v0 }
 0x4cb   : > { %v1047_v4 = vadd.f32 %v1046_v1, %v1042_v3 }
 0x4cc   : > { %v2443_v5 = vpop.eup %2442 }
 0x4cd   : > { %v1014_v6 = vmul.f32 %v2443_v5, %v2821_v58  ;;  %v1051_v7 = vmax.f32 %v1047_v4, -8.0 }
 0x4cf   : > { %v1026_v9 = vmul.f32 %v1023_v53, %v1014_v6  ;;  %v1055_v10 = vmin.f32 %v1051_v7, 7.0 }
 0x4d0   : > { %v2445_v11 = vpop.eup %2444 }
 0x4d1   : > { %v1015_v12 = vmul.f32 %v2445_v11, %v2826_v62  ;;  %v1038_v54 = vadd.f32 %v1035_v63, %v1026_v9  ;;  %v2245_v13 = vcvt.f32.s32 %v1055_v10  ;;  %v2243_v18 = vand.u32 2147483647, %v1055_v10 }
 0x4d2   : > { %v2248_v19 = vand.u32 2147483648, %v1055_v10 }
 0x4d3   : > { %v1027_v14 = vmul.f32 %v1023_v53, %v1015_v12  ;;  %v1043_v15 = vmul.f32 %v1041_v61, %v1038_v54  ;;  %v2246_v16 = vcvt.s32.f32 %v2245_v13  ;;  %vm2244_vm4 = vcmp.lt.f32.partialorder %v2243_v18, 8388608.0 }
 0x4d4   : > { %v2447_v17 = vpop.eup %2446 }
 0x4d5   : > { %v1016_v20 = vmul.f32 %v2447_v17, %v2832_v2  ;;  %v1039_v22 = vadd.f32 %v1035_v63, %v1027_v14  ;;  %v1048_v23 = vadd.f32 %v1046_v1, %v1043_v15  ;;  %v2247_v24 = vand.u32 2147483647, %v2246_v16 }
 0x4d7   : > { %v1028_v58 = vmul.f32 %v1023_v53, %v1016_v20  ;;  %v1044_v26 = vmul.f32 %v1041_v61, %v1039_v22  ;;  %v1052_v27 = vmax.f32 %v1048_v23, -8.0  ;;  %v2249_v28 = vor.u32 %v2248_v19, %v2247_v24  ;;  %v2039_v23 = vld [vmem:[%s3141_s7] ss:$0 sm:$0xff] }
 0x4d9   : > { %v1040_v29 = vadd.f32 %v1035_v63, %v1028_v58  ;;  %v1049_v62 = vadd.f32 %v1046_v1, %v1044_v26  ;;  %v1056_v30 = vmin.f32 %v1052_v27, 7.0  ;;  %v2250_v32 = vsel %vm2244_vm4, %v2249_v28, %v1055_v10  ;;  %v2040_v58 = vld [vmem:[%s3098_s8] ss:$0 sm:$0xff] }
 0x4da   : > { %v1089_v33 = vpack.c.bf16 %v2250_v32, %v2250_v32  ;;  %v913_v28 = vstv %s2016_s27  ;;  %s2566_s27 = smov 64  }
 0x4db   : > { %v1045_v34 = vmul.f32 %v1041_v61, %v1040_v29  ;;  %v1053_v36 = vmax.f32 %v1049_v62, -8.0  ;;  %v2253_v37 = vcvt.f32.s32 %v1056_v30  ;;  %v2251_v44 = vand.u32 2147483647, %v1056_v30 }
 0x4dc   : > { %1094 = vrot.lane.b32.xlu1 %v1089_v33, %s2564_s23  ;;  %v2256_v47 = vand.u32 2147483648, %v1056_v30 }
 0x4dd   : > { %v1050_v39 = vadd.f32 %v1046_v1, %v1045_v34  ;;  %v1057_v2 = vmin.f32 %v1053_v36, 7.0  ;;  %v2254_v40 = vcvt.s32.f32 %v2253_v37  ;;  %vm2252_vm5 = vcmp.lt.f32.partialorder %v2251_v44, 8388608.0 }
 0x4df   : > { %v1054_v45 = vmax.f32 %v1050_v39, -8.0  ;;  %v2255_v46 = vand.u32 2147483647, %v2254_v40  ;;  %v2261_v48 = vcvt.f32.s32 %v1057_v2  ;;  %v2259_v52 = vand.u32 2147483647, %v1057_v2 }
 0x4e0   : > { %v2264_v56 = vand.u32 2147483648, %v1057_v2 }
 0x4e1   : > { %v1058_v49 = vmin.f32 %v1054_v45, 7.0  ;;  %v2257_v50 = vor.u32 %v2256_v47, %v2255_v46  ;;  %v2262_v51 = vcvt.s32.f32 %v2261_v48  ;;  %vm2260_vm6 = vcmp.lt.f32.partialorder %v2259_v52, 8388608.0 }
 0x4e3   : > { %v2258_v53 = vsel %vm2252_vm5, %v2257_v50, %v1056_v30  ;;  %v2263_v55 = vand.u32 2147483647, %v2262_v51  ;;  %v2269_v57 = vcvt.f32.s32 %v1058_v49  ;;  %v2267_v63 = vand.u32 2147483647, %v1058_v49 }
 0x4e4   : > { %v1090_v59 = vpack.c.bf16 %v2258_v53, %v2258_v53  ;;  %v2272_v3 = vand.u32 2147483648, %v1058_v49 }
 0x4e5   : > { %v2265_v60 = vor.u32 %v2264_v56, %v2263_v55  ;;  %v2270_v61 = vcvt.s32.f32 %v2269_v57  ;;  %vm2268_vm7 = vcmp.lt.f32.partialorder %v2267_v63, 8388608.0 }
 0x4e6   : > { %1143 = vrot.lane.b32.xlu0 %v1090_v59, %s2564_s23 }
 0x4e7   : > { %v2266_v0 = vsel %vm2260_vm6, %v2265_v60, %v1057_v2  ;;  %v2271_v1 = vand.u32 2147483647, %v2270_v61 }
 0x4e8   : > { %v1091_v4 = vpack.c.bf16 %v2266_v0, %v2266_v0 }
 0x4e9   : > { %v2273_v5 = vor.u32 %v2272_v3, %v2271_v1 }
 0x4ea   : > { %1192 = vrot.lane.b32.xlu1 %v1091_v4, %s2564_s23 }
 0x4eb   : > { %v2274_v6 = vsel %vm2268_vm7, %v2273_v5, %v1058_v49 }
 0x4ec   : > { %v1092_v7 = vpack.c.bf16 %v2274_v6, %v2274_v6 }
 0x4ee   : > { %1241 = vrot.lane.b32.xlu1 %v1092_v7, %s2564_s23  ;;  %s2023_s23 = sld [smem:[#allocation2 + $0x9]] }
 0x4f6   : > { %v867_v9 = vpop.xlane.xlu1 %866 }
 0x4f7   : > { %v877_v10 = vmul.f32 0.125, %v867_v9 }
 0x4f9   : > { %v881_v11 = vadd.f32 1e-05, %v877_v10 }
 0x4fa   : > { %v873_v13 = vpop.xlane.xlu1 %872 }
 0x4fb   : > { %2448 = vrsqrt.f32 %v881_v11  ;;  %v879_v14 = vmul.f32 0.125, %v873_v13 }
 0x4fd   : > { %v883_v17 = vadd.f32 1e-05, %v879_v14 }
 0x503   : > { %v870_v12 = vpop.xlane.xlu0 %869 }
 0x504   : > { %v878_v54 = vmul.f32 0.125, %v870_v12 }
 0x506   : > { %v882_v15 = vadd.f32 1e-05, %v878_v54 }
 0x507   : > { %v876_v16 = vpop.xlane.xlu0 %875 }
 0x508   : > { %2450 = vrsqrt.f32 %v882_v15  ;;  %v880_v18 = vmul.f32 0.125, %v876_v16  ;;  %v2449_v19 = vpop.eup %2448 }
 0x509   : > { %2452 = vrsqrt.f32 %v883_v17  ;;  %v889_v22 = vmul.f32 %v2449_v19, %v2857_v21  ;;  %v918_v21 = vstv %s2017_s5  ;;  %s2568_s5 = smov 16  }
 0x50a   : > { %v884_v20 = vadd.f32 1e-05, %v880_v18 }
 0x50b   : > { %v899_v24 = vmul.f32 %v2039_v23, %v889_v22 }
 0x50c   : > { %2454 = vrsqrt.f32 %v884_v20 }
 0x50d   : > { %v909_v27 = vadd.f32 %v2040_v58, %v899_v24 }
 0x50f   : > { %v914_v30 = vmul.f32 %v913_v28, %v909_v27 }
 0x511   : > { %v919_v36 = vadd.f32 %v918_v21, %v914_v30 }
 0x513   : > { %v923_v40 = vmax.f32 %v919_v36, -8.0 }
 0x515   : > { %v2451_v26 = vpop.eup %2450  ;;  %v927_v47 = vmin.f32 %v923_v40, 7.0 }
 0x516   : > { %v890_v29 = vmul.f32 %v2451_v26, %v2869_v31  ;;  %v2453_v62 = vpop.eup %2452 }
 0x517   : > { %v891_v32 = vmul.f32 %v2453_v62, %v2862_v25  ;;  %v2213_v50 = vcvt.f32.s32 %v927_v47  ;;  %v2216_v60 = vand.u32 2147483648, %v927_v47  ;;  %v2211_v0 = vand.u32 2147483647, %v927_v47 }
 0x518   : > { %v900_v33 = vmul.f32 %v2039_v23, %v890_v29 }
 0x519   : > { %v2455_v34 = vpop.eup %2454  ;;  %v901_v37 = vmul.f32 %v2039_v23, %v891_v32  ;;  %v2214_v25 = vcvt.s32.f32 %v2213_v50  ;;  %vm2212_vm8 = vcmp.lt.f32.partialorder %v2211_v0, 8388608.0 }
 0x51a   : > { %v910_v39 = vadd.f32 %v2040_v58, %v900_v33  ;;  %v892_v2 = vmul.f32 %v2455_v34, %v2874_v35 }
 0x51b   : > { %v911_v44 = vadd.f32 %v2040_v58, %v901_v37  ;;  %v2215_v59 = vand.u32 2147483647, %v2214_v25 }
 0x51c   : > { %v915_v45 = vmul.f32 %v913_v28, %v910_v39  ;;  %v902_v46 = vmul.f32 %v2039_v23, %v892_v2  ;;  %v1289_v39 = vstv %s2022_s26  ;;  %s2074_s26 = sshll.u32 %s2707_s4, 7  ;;  %s2570_s4 = smov [#allocation5]  }
 0x51d   : > { %v916_v31 = vmul.f32 %v913_v28, %v911_v44  ;;  %v2217_v3 = vor.u32 %v2216_v60, %v2215_v59 }
 0x51e   : > { %v912_v48 = vadd.f32 %v2040_v58, %v902_v46  ;;  %v920_v49 = vadd.f32 %v918_v21, %v915_v45 }
 0x51f   : > { %v921_v53 = vadd.f32 %v918_v21, %v916_v31  ;;  %v2218_v9 = vsel %vm2212_vm8, %v2217_v3, %v927_v47  ;;  %vm1583_vm8 = vcmask 130048  }
 0x520   : > { %v917_v51 = vmul.f32 %v913_v28, %v912_v48  ;;  %v924_v52 = vmax.f32 %v920_v49, -8.0  ;;  %v1085_v54 = vpack.c.bf16 %v2218_v9, %v2218_v9 }
 0x521   : > { %v925_v56 = vmax.f32 %v921_v53, -8.0 }
 0x522   : > { %v928_v55 = vmin.f32 %v924_v52, 7.0  ;;  %v922_v57 = vadd.f32 %v918_v21, %v917_v51 }
 0x523   : > { %v929_v35 = vmin.f32 %v925_v56, 7.0 }
 0x524   : > { %v2221_v61 = vcvt.f32.s32 %v928_v55  ;;  %v926_v63 = vmax.f32 %v922_v57, -8.0  ;;  %v2224_v13 = vand.u32 2147483648, %v928_v55  ;;  %v2219_v14 = vand.u32 2147483647, %v928_v55 }
 0x525   : > { %v2229_v6 = vcvt.f32.s32 %v929_v35  ;;  %v2232_v20 = vand.u32 2147483648, %v929_v35  ;;  %v2227_v22 = vand.u32 2147483647, %v929_v35 }
 0x526   : > { %v2222_v5 = vcvt.s32.f32 %v2221_v61  ;;  %v930_v7 = vmin.f32 %v926_v63, 7.0  ;;  %vm2220_vm9 = vcmp.lt.f32.partialorder %v2219_v14, 8388608.0 }
 0x527   : > { %v2230_v11 = vcvt.s32.f32 %v2229_v6  ;;  %vm2228_vm10 = vcmp.lt.f32.partialorder %v2227_v22, 8388608.0 }
 0x528   : > { %v2223_v10 = vand.u32 2147483647, %v2222_v5  ;;  %v2237_v12 = vcvt.f32.s32 %v930_v7  ;;  %v2240_v28 = vand.u32 2147483648, %v930_v7  ;;  %v2235_v62 = vand.u32 2147483647, %v930_v7 }
 0x529   : > { %v2231_v17 = vand.u32 2147483647, %v2230_v11 }
 0x52a   : > { %v2225_v16 = vor.u32 %v2224_v13, %v2223_v10  ;;  %v2238_v18 = vcvt.s32.f32 %v2237_v12  ;;  %vm2236_vm11 = vcmp.lt.f32.partialorder %v2235_v62, 8388608.0 }
 0x52b   : > { %v2233_v58 = vor.u32 %v2232_v20, %v2231_v17 }
 0x52c   : > { %v2226_v24 = vsel %vm2220_vm9, %v2225_v16, %v928_v55  ;;  %v2239_v26 = vand.u32 2147483647, %v2238_v18  ;;  %vm1585_vm9 = vcmask 195584  }
 0x52d   : > { %v1086_v29 = vpack.c.bf16 %v2226_v24, %v2226_v24  ;;  %v2234_v21 = vsel %vm2228_vm10, %v2233_v58, %v929_v35 }
 0x52e   : > { %v2241_v32 = vor.u32 %v2240_v28, %v2239_v26  ;;  %v1087_v34 = vpack.c.bf16 %v2234_v21, %v2234_v21 }
 0x530   : > { %v2242_v36 = vsel %vm2236_vm11, %v2241_v32, %v930_v7  ;;  %v1063_v7 = vstv %s2020_s1 }
 0x531   : > { %v1088_v37 = vpack.c.bf16 %v2242_v36, %v2242_v36  ;;  %v1064_v12 = vmul.f32 %v1063_v7, %v2791_v38  ;;  %v1066_v16 = vmul.f32 %v1063_v7, %v2802_v42  ;;  %v1065_v58 = vmul.f32 %v1063_v7, %v2798_v41 }
 0x54e   : > { %v1095_v1 = vpop.permute.xlu1 %1094 }
 0x54f   : > { %v1100_v4 = vsel %vm839_vm3, %v1095_v1, 0 }
 0x550   : > { %2120 = vmatpush3.bf16.xpose.msra.mxu0 %v1100_v4 }
 0x551   : > { %2125 = vmatprep.subr.bf16.mxu0 %v2559_v8 }
 0x557   : > { %2122 = vmatmul.mubr.msk.bf16.vlgmr.msra.gmra.mxu0 %vm839_vm3, %v1085_v54  ;;  %v1068_v54 = vstv %s2021_s29  ;;  %s2569_s29 = smov 24  }
 0x558   : > { %v1144_v15 = vpop.permute.xlu0 %1143  ;;  %2127 = vmatprep.mubr.msk.bf16.mxu0 %vm2560_vm1, %v2559_v8  ;;  %v1069_v18 = vadd.f32 %v1068_v54, %v1064_v12  ;;  %v1071_v38 = vadd.f32 %v1068_v54, %v1066_v16  ;;  %v1070_v42 = vadd.f32 %v1068_v54, %v1065_v58 }
 0x559   : > { %v1149_v19 = vsel %vm839_vm3, %v1144_v15, 0 }
 0x55a   : > { %2126 = vmatpush3.bf16.xpose.msra.mxu0 %v1149_v19  ;;  %v1073_v24 = vmax.f32 %v1069_v18, -8.0 }
 0x55b   : > { %2137 = vmatprep.subr.bf16.mxu0 %v2559_v8 }
 0x55c   : > { %v1193_v23 = vpop.permute.xlu1 %1192  ;;  %v1077_v28 = vmin.f32 %v1073_v24, 7.0 }
 0x55d   : > { %v1198_v27 = vsel %vm839_vm3, %v1193_v23, 0  ;;  %v1067_v23 = vmul.f32 %v1063_v7, %v2806_v43 }
 0x55e   : > { %2132 = vmatpush3.bf16.xpose.msra.mxu1 %v1198_v27  ;;  %v1075_v27 = vmax.f32 %v1071_v38, -8.0  ;;  %v2277_v32 = vcvt.f32.s32 %v1077_v28 }
 0x55f   : > { %2143 = vmatprep.subr.bf16.mxu1 %v2559_v8  ;;  %v1072_v26 = vadd.f32 %v1068_v54, %v1067_v23 }
 0x560   : > { %v1242_v30 = vpop.permute.xlu1 %1241  ;;  %v1079_v21 = vmin.f32 %v1075_v27, 7.0  ;;  %v2278_v36 = vcvt.s32.f32 %v2277_v32 }
 0x561   : > { %v1247_v33 = vsel %vm839_vm3, %v1242_v30, 0  ;;  %2128 = vmatmul.mubr.msk.bf16.vlgmr.msra.gmra.mxu0 %vm839_vm3, %v1086_v29  ;;  %v1076_v30 = vmax.f32 %v1072_v26, -8.0 }
 0x562   : > { %2138 = vmatpush3.bf16.xpose.msra.mxu0 %v1247_v33  ;;  %2139 = vmatprep.mubr.msk.bf16.mxu0 %vm2560_vm1, %v2559_v8  ;;  %v1074_v33 = vmax.f32 %v1070_v42, -8.0 }
 0x563   : > { %2149 = vmatprep.subr.bf16.mxu0 %v2559_v8 }
 0x565   : > { %2134 = vmatmul.mubr.msk.bf16.vlgmr.msra.gmra.mxu1 %vm839_vm3, %v1087_v34  ;;  %v1080_v34 = vmin.f32 %v1076_v30, 7.0 }
 0x566   : > { %2145 = vmatprep.mubr.msk.bf16.mxu1 %vm2560_vm1, %v2559_v8 }
 0x569   : > { %2140 = vmatmul.mubr.msk.bf16.vlgmr.msra.gmra.mxu0 %vm839_vm3, %v1088_v37  ;;  %v2293_v37 = vcvt.f32.s32 %v1079_v21 }
 0x56a   : > { %2151 = vmatprep.mubr.msk.bf16.mxu0 %vm2560_vm1, %v2559_v8 }
 0x617   : > { %v1136_v2 = vpop.f32.mrf.mxu0 }
 0x618   : > { %v1290_v40 = vmul.f32 %v1289_v39, %v1136_v2 }
 0x619   : > { %v2123_v44 = vpop.f32.mrf.mxu0 }
 0x61a   : > { %v1294_v45 = vsel %vm839_vm3, %v1290_v40, -inf  ;;  %v2279_v44 = vand.u32 2147483647, %v2278_v36 }
 0x61b   : > { %1295 = vmax.xlane.f32.xlu0 %v1294_v45  ;;  %v1139_v46 = vpop.f32.mrf.mxu0  ;;  %v2294_v45 = vcvt.s32.f32 %v2293_v37 }
 0x61c   : > { %v2301_v46 = vcvt.f32.s32 %v1080_v34 }
 0x61d   : > { %v2124_v47 = vpop.f32.mrf.mxu0 }
 0x621   : > { %v1185_v48 = vpop.f32.mrf.mxu0 }
 0x622   : > { %v1291_v49 = vmul.f32 %v1289_v39, %v1185_v48  ;;  %v2280_v48 = vand.u32 2147483648, %v1077_v28 }
 0x623   : > { %v2129_v31 = vpop.f32.mrf.mxu0 }
 0x624   : > { %v1297_v50 = vsel %vm839_vm3, %v1291_v49, -inf  ;;  %v2281_v31 = vor.u32 %v2280_v48, %v2279_v44 }
 0x625   : > { %v1234_v51 = vpop.f32.mrf.mxu1  ;;  %1298 = vmax.xlane.f32.xlu1 %v1297_v50  ;;  %v1188_v52 = vpop.f32.mrf.mxu0  ;;  %v2295_v50 = vand.u32 2147483647, %v2294_v45 }
 0x626   : > { %v1292_v53 = vmul.f32 %v1289_v39, %v1234_v51  ;;  %v2302_v51 = vcvt.s32.f32 %v2301_v46 }
 0x627   : > { %v2130_v25 = vpop.f32.mrf.mxu0  ;;  %v2135_v55 = vpop.f32.mrf.mxu1 }
 0x628   : > { %v1300_v56 = vsel %vm839_vm3, %v1292_v53, -inf  ;;  %v2291_v25 = vand.u32 2147483647, %v1079_v21 }
 0x629   : > { %v1237_v57 = vpop.f32.mrf.mxu1  ;;  %1301 = vmax.xlane.f32.xlu0 %v1300_v56  ;;  %v1283_v59 = vpop.f32.mrf.mxu0 }
 0x62a   : > { %v1293_v60 = vmul.f32 %v1289_v39, %v1283_v59  ;;  %v1078_v39 = vmin.f32 %v1074_v33, 7.0  ;;  %v2303_v57 = vand.u32 2147483647, %v2302_v51  ;;  %vm2292_vm13 = vcmp.lt.f32.partialorder %v2291_v25, 8388608.0 }
 0x62b   : > { %v2136_v61 = vpop.f32.mrf.mxu1  ;;  %v2141_v35 = vpop.f32.mrf.mxu0 }
 0x62c   : > { %v1303_v63 = vsel %vm839_vm3, %v1293_v60, -inf  ;;  %v2285_v47 = vcvt.f32.s32 %v1078_v39  ;;  %v2299_v35 = vand.u32 2147483647, %v1080_v34 }
 0x62d   : > { %1304 = vmax.xlane.f32.xlu0 %v1303_v63  ;;  %v1286_v0 = vpop.f32.mrf.mxu0  ;;  %v2288_v63 = vand.u32 2147483648, %v1078_v39 }
 0x62e   : > { %v2286_v52 = vcvt.s32.f32 %v2285_v47  ;;  %vm2300_vm14 = vcmp.lt.f32.partialorder %v2299_v35, 8388608.0 }
 0x62f   : > { %v2142_v1 = vpop.f32.mrf.mxu0 }
 0x630   : > { %v2287_v59 = vand.u32 2147483647, %v2286_v52 }
 0x6a4   : > { %v1296_v3 = vpop.xlane.xlu0 %1295 }
 0x6a5   : > { %v1306_v4 = vsub.f32 %v1290_v40, %v1296_v3  ;;  %v2283_v3 = vand.u32 2147483647, %v1078_v39 }
 0x6a7   : > { %v1310_v5 = vmul.f32 1.442695, %v1306_v4  ;;  %v2289_v4 = vor.u32 %v2288_v63, %v2287_v59  ;;  %vm2284_vm15 = vcmp.lt.f32.partialorder %v2283_v3, 8388608.0 }
 0x6a9   : > { %2456 = vpow2.f32 %v1310_v5  ;;  %v2290_v7 = vsel %vm2284_vm15, %v2289_v4, %v1078_v39 }
 0x6ae   : > { %v1299_v6 = vpop.xlane.xlu1 %1298 }
 0x6af   : > { %v1307_v9 = vsub.f32 %v1291_v49, %v1299_v6  ;;  %v2275_v49 = vand.u32 2147483647, %v1077_v28 }
 0x6b1   : > { %v1312_v10 = vmul.f32 1.442695, %v1307_v9  ;;  %vm2276_vm12 = vcmp.lt.f32.partialorder %v2275_v49, 8388608.0 }
 0x6b2   : > { %v1302_v11 = vpop.xlane.xlu0 %1301  ;;  %v2282_v55 = vsel %vm2276_vm12, %v2281_v31, %v1077_v28 }
 0x6b3   : > { %2458 = vpow2.f32 %v1312_v10  ;;  %v1308_v13 = vsub.f32 %v1292_v53, %v1302_v11  ;;  %v2296_v53 = vand.u32 2147483648, %v1079_v21  ;;  %v1369_v61 = vpack.c.bf16 %v2282_v55, %v2282_v55 }
 0x6b4   : > { %v1370_v10 = vpack.c.bf16 %v2290_v7, %v2290_v7 }
 0x6b5   : > { %v1314_v14 = vmul.f32 1.442695, %v1308_v13  ;;  %v2297_v56 = vor.u32 %v2296_v53, %v2295_v50  ;;  %v1338_v13 = vstv %s2023_s23 }
 0x6b6   : > { %v2923_v15 = vpop.eup %2456  ;;  %v1305_v17 = vpop.xlane.xlu0 %1304 }
 0x6b7   : > { %2460 = vpow2.f32 %v1314_v14  ;;  %v1309_v19 = vsub.f32 %v1293_v60, %v1305_v17  ;;  %v1318_v20 = vsel %vm839_vm3, %v2923_v15, 0.0  ;;  %v2304_v60 = vand.u32 2147483648, %v1080_v34 }
 0x6b8   : > { %1319 = vadd.xlane.f32.xlu1 %v1318_v20  ;;  %v2298_v0 = vsel %vm2292_vm13, %v2297_v56, %v1079_v21  ;;  %v1343_v17 = vstv %s2024_s25  ;;  %s2026_s25 = sld [smem:[#allocation2 + $0xc]] }
 0x6b9   : > { %v1316_v22 = vmul.f32 1.442695, %v1309_v19  ;;  %v2305_v1 = vor.u32 %v2304_v60, %v2303_v57  ;;  %v1371_v5 = vpack.c.bf16 %v2298_v0, %v2298_v0 }
 0x6bb   : > { %2462 = vpow2.f32 %v1316_v22  ;;  %v2306_v6 = vsel %vm2300_vm14, %v2305_v1, %v1080_v34 }
 0x6bc   : > { %v1372_v9 = vpack.c.bf16 %v2306_v6, %v2306_v6 }
 0x6c0   : > { %v2930_v29 = vpop.eup %2458 }
 0x6c1   : > { %v1321_v62 = vsel %vm839_vm3, %v2930_v29, 0.0 }
 0x6c2   : > { %1322 = vadd.xlane.f32.xlu0 %v1321_v62 }
 0x6c4   : > { %v2934_v43 = vpop.eup %2460 }
 0x6c5   : > { %v1324_v41 = vsel %vm839_vm3, %v2934_v43, 0.0 }
 0x6c6   : > { %1325 = vadd.xlane.f32.xlu1 %v1324_v41 }
 0x6c8   : > { %v2938_v2 = vpop.eup %2462 }
 0x6c9   : > { %v1327_v40 = vsel %vm839_vm3, %v2938_v2, 0.0 }
 0x6ca   : > { %1328 = vadd.xlane.f32.xlu0 %v1327_v40  ;;  %v1360_v40 = vstv %s2025_s2  ;;  %s2027_s2 = sld [smem:[#allocation2 + $0xd]] }
 0x6d7   : > { %1374 = vrot.lane.b32.xlu1 %v1369_v61, %s2566_s27 }
 0x6db   : > { %1473 = vrot.lane.b32.xlu1 %v1371_v5, %s2566_s27 }
 0x6df   : > { %1522 = vrot.lane.b32.xlu1 %v1372_v9, %s2566_s27 }
 0x6e0   : > { %1424 = vrot.lane.b32.xlu0 %v1370_v10, %s2566_s27  ;;  %s2031_s27 = sld [smem:[#allocation2 + $0x11]] }
 0x741   : > { %v1320_v11 = vpop.xlane.xlu1 %1319 }
 0x742   : > { %2464 = vrcp.f32 %v1320_v11 }
 0x74b   : > { %v1323_v12 = vpop.xlane.xlu0 %1322 }
 0x74c   : > { %2466 = vrcp.f32 %v1323_v12 }
 0x74f   : > { %v2465_v54 = vpop.eup %2464  ;;  %v1326_v14 = vpop.xlane.xlu1 %1325 }
 0x750   : > { %v1334_v16 = vmul.f32 %v2465_v54, %v2923_v15  ;;  %2468 = vrcp.f32 %v1326_v14 }
 0x752   : > { %v1339_v18 = vmul.f32 %v1338_v13, %v1334_v16 }
 0x753   : > { %v1375_v19 = vpop.permute.xlu1 %1374  ;;  %v1329_v20 = vpop.xlane.xlu0 %1328 }
 0x754   : > { %v1344_v22 = vadd.f32 %v1343_v17, %v1339_v18  ;;  %v1381_v23 = vsel %vm1379_vm2, %v1375_v19, 0  ;;  %2470 = vrcp.f32 %v1329_v20 }
 0x755   : > { %2144 = vmatpush3.bf16.msra.mxu1 %v1381_v23 }
 0x756   : > { %v1348_v38 = vmax.f32 %v1344_v22, 0.0  ;;  %2155 = vmatprep.subr.bf16.mxu1 %v2559_v8 }
 0x757   : > { %v1425_v24 = vpop.permute.xlu0 %1424  ;;  %v1474_v50 = vpop.permute.xlu1 %1473 }
 0x758   : > { %v1352_v58 = vmin.f32 %v1348_v38, 15.0  ;;  %v1430_v26 = vsel %vm1379_vm2, %v1425_v24, 0  ;;  %v1479_v55 = vsel %vm1379_vm2, %v1474_v50, 0 }
 0x759   : > { %v2467_v15 = vpop.eup %2466  ;;  %2150 = vmatpush3.bf16.msra.mxu0 %v1430_v26 }
 0x75a   : > { %v1335_v27 = vmul.f32 %v2467_v15, %v2930_v29  ;;  %v2309_v28 = vcvt.f32.s32 %v1352_v58  ;;  %2161 = vmatprep.subr.bf16.mxu0 %v2559_v8  ;;  %v2307_v21 = vand.u32 2147483647, %v1352_v58  ;;  %v2312_v34 = vand.u32 2147483648, %v1352_v58 }
 0x75b   : > { %v1523_v7 = vpop.permute.xlu1 %1522 }
 0x75c   : > { %v1340_v42 = vmul.f32 %v1338_v13, %v1335_v27  ;;  %v2310_v62 = vcvt.s32.f32 %v2309_v28  ;;  %vm2308_vm4 = vcmp.lt.f32.partialorder %v2307_v21, 8388608.0  ;;  %v1528_v16 = vsel %vm1379_vm2, %v1523_v7, 0 }
 0x75d   : > { %v2469_v30 = vpop.eup %2468 }
 0x75e   : > { %v1345_v32 = vadd.f32 %v1343_v17, %v1340_v42  ;;  %v1336_v33 = vmul.f32 %v2469_v30, %v2934_v43  ;;  %v2311_v41 = vand.u32 2147483647, %v2310_v62 }
 0x760   : > { %v1349_v36 = vmax.f32 %v1345_v32, 0.0  ;;  %v1341_v37 = vmul.f32 %v1338_v13, %v1336_v33  ;;  %v2313_v39 = vor.u32 %v2312_v34, %v2311_v41  ;;  %v2426_v33 = vld [vmem:[%s3101_s11 + $0x8] sm:$0xff]  }
 0x761   : > { %v2471_v44 = vpop.eup %2470 }
 0x762   : > { %v1353_v45 = vmin.f32 %v1349_v36, 15.0  ;;  %v1346_v29 = vadd.f32 %v1343_v17, %v1341_v37  ;;  %v1337_v46 = vmul.f32 %v2471_v44, %v2938_v2  ;;  %v2314_v47 = vsel %vm2308_vm4, %v2313_v39, %v1352_v58  ;;  %v2427_v36 = vld [vmem:[%s3101_s11] sm:$0xff]  }
 0x763   : > { %v1361_v48 = vsub.f32 %v2314_v47, %v1360_v40 }
 0x764   : > { %v1350_v49 = vmax.f32 %v1346_v29, 0.0  ;;  %v1342_v31 = vmul.f32 %v1338_v13, %v1337_v46  ;;  %v2317_v51 = vcvt.f32.s32 %v1353_v45  ;;  %v2315_v56 = vand.u32 2147483647, %v1353_v45 }
 0x765   : > { %v1365_v52 = vpack.c.bf16 %v1361_v48, %v1361_v48  ;;  %v2320_v60 = vand.u32 2147483648, %v1353_v45  ;;  %v1587_v29 = vstv %s2026_s25  ;;  %v1589_v48 = vstv %s2027_s2  ;;  %s2028_s25 = sld [smem:[#allocation2 + $0xe]] }
 0x766   : > { %v1354_v43 = vmin.f32 %v1350_v49, 15.0  ;;  %v1347_v53 = vadd.f32 %v1343_v17, %v1342_v31  ;;  %v2318_v25 = vcvt.s32.f32 %v2317_v51  ;;  %vm2316_vm5 = vcmp.lt.f32.partialorder %v2315_v56, 8388608.0  ;;  %s2029_s2 = sld [smem:[#allocation2 + $0xf]] }
 0x767   : > { %2146 = vmatmul.mubr.msk.bf16.vlgmr.msra.gmra.mxu1 %vm839_vm3, %v1365_v52 }
 0x768   : > { %v1351_v57 = vmax.f32 %v1347_v53, 0.0  ;;  %2156 = vmatpush3.bf16.msra.mxu1 %v1479_v55  ;;  %v2319_v59 = vand.u32 2147483647, %v2318_v25  ;;  %2157 = vmatprep.mubr.msk.bf16.mxu1 %vm2560_vm1, %v2559_v8  ;;  %v2325_v2 = vcvt.f32.s32 %v1354_v43  ;;  %v2323_v0 = vand.u32 2147483647, %v1354_v43 }
 0x769   : > { %2167 = vmatprep.subr.bf16.mxu1 %v2559_v8  ;;  %v2328_v4 = vand.u32 2147483648, %v1354_v43 }
 0x76a   : > { %v1355_v61 = vmin.f32 %v1351_v57, 15.0  ;;  %v2321_v35 = vor.u32 %v2320_v60, %v2319_v59  ;;  %v2326_v63 = vcvt.s32.f32 %v2325_v2  ;;  %vm2324_vm6 = vcmp.lt.f32.partialorder %v2323_v0, 8388608.0  ;;  %v2054_v2 = vld [vmem:[%s3102_s12] ss:$0 sm:$0xff] }
 0x76c   : > { %v2322_v1 = vsel %vm2316_vm5, %v2321_v35, %v1353_v45  ;;  %v2327_v3 = vand.u32 2147483647, %v2326_v63  ;;  %v2333_v5 = vcvt.f32.s32 %v1355_v61  ;;  %v2331_v12 = vand.u32 2147483647, %v1355_v61  ;;  %v2055_v35 = vld [vmem:[%s3103_s13] ss:$0 sm:$0xff] }
 0x76d   : > { %v1362_v6 = vsub.f32 %v2322_v1, %v1360_v40  ;;  %v2336_v14 = vand.u32 2147483648, %v1355_v61 }
 0x76e   : > { %v2329_v9 = vor.u32 %v2328_v4, %v2327_v3  ;;  %v2334_v10 = vcvt.s32.f32 %v2333_v5  ;;  %vm2332_vm7 = vcmp.lt.f32.partialorder %v2331_v12, 8388608.0  ;;  %v2476_v4 = vld [vmem:[%s2757_s24] sm:$0xff]  ;;  %s686_s24 = sand.u32 1, %s2548_s28  }
 0x76f   : > { %v1366_v11 = vpack.c.bf16 %v1362_v6, %v1362_v6  ;;  %s2013_s23 = sshll.u32 %s686_s24, 3 }
 0x770   : > { %v2330_v54 = vsel %vm2324_vm6, %v2329_v9, %v1354_v43  ;;  %v2335_v13 = vand.u32 2147483647, %v2334_v10  ;;  %s688_s1 = scalar_lea.vmem [#allocation5], %s2013_s23  ;;  %s2496_s23 = sshll.u32 %s2570_s4, 4  ;;  %s2497_s23 = int_to_ptr.vmem [resolvable:$false] %s2496_s23 }
 0x771   : > { %2152 = vmatmul.mubr.msk.bf16.vlgmr.msra.gmra.mxu0 %vm839_vm3, %v1366_v11  ;;  %v1363_v17 = vsub.f32 %v2330_v54, %v1360_v40 }
 0x772   : > { %2162 = vmatpush3.bf16.msra.mxu0 %v1528_v16  ;;  %2163 = vmatprep.mubr.msk.bf16.mxu0 %vm2560_vm1, %v2559_v8  ;;  %v2337_v18 = vor.u32 %v2336_v14, %v2335_v13  ;;  %v2428_v13 = vld [vmem:[%s3106_s16 + $0x8] sm:$0xff]   ;;  %v2429_v14 = vld [vmem:[%s3106_s16] sm:$0xff]  }
 0x773   : > { %v1367_v19 = vpack.c.bf16 %v1363_v17, %v1363_v17  ;;  %2175 = vmatprep.subr.bf16.mxu0 %v2559_v8 }
 0x774   : > { %v2338_v20 = vsel %vm2332_vm7, %v2337_v18, %v1355_v61 }
 0x775   : > { %2158 = vmatmul.mubr.msk.bf16.vlgmr.msra.gmra.mxu1 %vm839_vm3, %v1367_v19  ;;  %v1364_v22 = vsub.f32 %v2338_v20, %v1360_v40  ;;  %v2056_v20 = vld [vmem:[%s3104_s14] ss:$0 sm:$0xff] }
 0x776   : > { %2171 = vmatprep.mubr.msk.bf16.mxu1 %vm2560_vm1, %v2559_v8  ;;  %2168 = vmatpush3.bf16.msra.mxu1 %v2426_v33 }
 0x777   : > { %v1368_v23 = vpack.c.bf16 %v1364_v22, %v1364_v22  ;;  %2169 = vmatprep.subr.bf16.mxu1 %v2559_v8 }
 0x779   : > { %2164 = vmatmul.mubr.msk.bf16.vlgmr.msra.gmra.mxu0 %vm839_vm3, %v1368_v23  ;;  %v2057_v23 = vld [vmem:[%s3105_s15] ss:$0 sm:$0xff] }
 0x77a   : > { %2179 = vmatprep.mubr.msk.bf16.mxu0 %vm2560_vm1, %v2559_v8  ;;  %2170 = vmatpush3.bf16.msra.mxu1 %v2427_v36 }
 0x77b   : > { %2183 = vmatprep.subr.bf16.mxu1 %v2559_v8  ;;  %2176 = vmatpush3.bf16.msra.mxu0 %v2428_v13 }
 0x77c   : > { %2177 = vmatprep.subr.bf16.mxu0 %v2559_v8 }
 0x77f   : > { %2178 = vmatpush3.bf16.msra.mxu0 %v2429_v14  ;;  %v2071_v14 = vld [vmem:[%s3110_s20] ss:$0 sm:$0xff] }
 0x827   : > { %v1417_v38 = vpop.f32.mrf.mxu1 }
 0x829   : > { %v2147_v24 = vpop.f32.mrf.mxu1 }
 0x82a   : > { %v1700_v24 = vstv %s2028_s25  ;;  %s3054_s25 = scalar_lea.hbm %s3112_s22, %s2074_s26 }
 0x82b   : > { %v1420_v58 = vpop.f32.mrf.mxu1 }
 0x82d   : > { %v2148_v26 = vpop.f32.mrf.mxu1 }
 0x82e   : > { %v1702_v26 = vstv %s2029_s2  ;;  %s1923_s2 = scalar_lea.sflag [#allocation3], %s686_s24 }
 0x831   : > { %v1466_v15 = vpop.f32.mrf.mxu0 }
 0x832   : > { %1571 = vrot.lane.b32.xlu0 %v1466_v15, %s2567_s0 }
 0x833   : > { %v2153_v27 = vpop.f32.mrf.mxu0 }
 0x835   : > { %v1469_v28 = vpop.f32.mrf.mxu0  ;;  %v1515_v42 = vpop.f32.mrf.mxu1 }
 0x836   : > { %1575 = vrot.lane.b32.xlu1 %v1515_v42, %s2568_s5  ;;  %s2498_s5 = scalar_lea.vmem %s2497_s23, 256 }
 0x837   : > { %v2154_v62 = vpop.f32.mrf.mxu0  ;;  %v2159_v30 = vpop.f32.mrf.mxu1 }
 0x839   : > { %v1518_v21 = vpop.f32.mrf.mxu1  ;;  %v1564_v32 = vpop.f32.mrf.mxu0 }
 0x83a   : > { %1579 = vrot.lane.b32.xlu0 %v1564_v32, %s2569_s29  ;;  %s2030_s29 = sld [smem:[#allocation2 + $0x10]] }
 0x83b   : > { %v2160_v41 = vpop.f32.mrf.mxu1  ;;  %v2165_v34 = vpop.f32.mrf.mxu0 }
 0x83d   : > { %v1567_v37 = vpop.f32.mrf.mxu0 }
 0x83e   : > { %v2430_v37 = vld [vmem:[%s3109_s19 + $0x38] sm:$0xff]  }
 0x83f   : > { %v2166_v39 = vpop.f32.mrf.mxu0 }
 0x840   : > { %v2431_v39 = vld [vmem:[%s3109_s19 + $0x30] sm:$0xff]  }
 0x8a4   : > { %v1572_v40 = vpop.permute.xlu0 %1571 }
 0x8a5   : > { %v1582_v45 = vsel %vm839_vm3, %v1417_v38, %v1572_v40  ;;  %v2432_v40 = vld [vmem:[%s3109_s19 + $0x28] sm:$0xff]  }
 0x8a8   : > { %v1576_v44 = vpop.permute.xlu1 %1575 }
 0x8a9   : > { %v1584_v46 = vsel %vm1583_vm8, %v1582_v45, %v1576_v44  ;;  %v2433_v44 = vld [vmem:[%s3109_s19 + $0x20] sm:$0xff]   ;;  %v2434_v45 = vld [vmem:[%s3109_s19 + $0x18] sm:$0xff]  }
 0x8ac   : > { %v1580_v47 = vpop.permute.xlu0 %1579 }
 0x8ad   : > { %v1586_v49 = vsel %vm1585_vm9, %v1584_v46, %v1580_v47  ;;  %v2436_v46 = vld [vmem:[%s3109_s19 + $0x8] sm:$0xff]   ;;  %v2437_v47 = vld [vmem:[%s3109_s19] sm:$0xff]  }
 0x8ae   : > { %v1588_v31 = vmul.f32 %v1587_v29, %v1586_v49  ;;  %v2435_v29 = vld [vmem:[%s3109_s19 + $0x10] sm:$0xff]  }
 0x8b0   : > { %v1590_v50 = vadd.f32 %v1589_v48, %v1588_v31  ;;  %v2061_v48 = vld [vmem:[%s3107_s17] ss:$0 sm:$0xff] }
 0x8b1   : > { %v2062_v31 = vld [vmem:[%s3108_s18] ss:$0 sm:$0xff] }
 0x8b2   : > { %v1591_v51 = vmax.f32 %v1590_v50, -8.0 }
 0x8b4   : > { %v1592_v52 = vmin.f32 %v1591_v51, 7.0 }
 0x8b6   : > { %v2341_v43 = vcvt.f32.s32 %v1592_v52  ;;  %v2339_v25 = vand.u32 2147483647, %v1592_v52  ;;  %v2344_v56 = vand.u32 2147483648, %v1592_v52 }
 0x8b8   : > { %v2342_v53 = vcvt.s32.f32 %v2341_v43  ;;  %vm2340_vm10 = vcmp.lt.f32.partialorder %v2339_v25, 8388608.0 }
 0x8ba   : > { %v2343_v55 = vand.u32 2147483647, %v2342_v53 }
 0x8bc   : > { %v2345_v57 = vor.u32 %v2344_v56, %v2343_v55 }
 0x8be   : > { %v2346_v59 = vsel %vm2340_vm10, %v2345_v57, %v1592_v52 }
 0x8bf   : > { %v1594_v60 = vpack.c.bf16 %v2346_v59, %v2346_v59 }
 0x8c1   : > { %2172 = vmatmul.mubr.msk.bf16.vlgmr.msra.gmra.mxu1 %vm715_vm0, %v1594_v60 }
 0x8c2   : > { %2199 = vmatprep.mubr.msk.bf16.mxu1 %vm2560_vm1, %v2559_v8  ;;  %2184 = vmatpush3.bf16.msra.mxu1 %v2430_v37 }
 0x8c3   : > { %2185 = vmatprep.subr.bf16.mxu1 %v2559_v8 }
 0x8c6   : > { %2186 = vmatpush3.bf16.msra.mxu1 %v2431_v39 }
 0x8c7   : > { %2187 = vmatprep.subr.bf16.mxu1 %v2559_v8 }
 0x8ca   : > { %2188 = vmatpush3.bf16.msra.mxu1 %v2432_v40 }
 0x8cb   : > { %2189 = vmatprep.subr.bf16.mxu1 %v2559_v8 }
 0x8ce   : > { %2190 = vmatpush3.bf16.msra.mxu1 %v2433_v44 }
 0x8cf   : > { %2191 = vmatprep.subr.bf16.mxu1 %v2559_v8 }
 0x8d2   : > { %2192 = vmatpush3.bf16.msra.mxu1 %v2434_v45 }
 0x8d3   : > { %2193 = vmatprep.subr.bf16.mxu1 %v2559_v8 }
 0x8d6   : > { %2194 = vmatpush3.bf16.msra.mxu1 %v2435_v29 }
 0x8d7   : > { %2195 = vmatprep.subr.bf16.mxu1 %v2559_v8 }
 0x8da   : > { %2196 = vmatpush3.bf16.msra.mxu1 %v2436_v46 }
 0x8db   : > { %2197 = vmatprep.subr.bf16.mxu1 %v2559_v8 }
 0x8de   : > { %2198 = vmatpush3.bf16.msra.mxu1 %v2437_v47 }
 0x981   : > { %v1648_v61 = vpop.f32.mrf.mxu1 }
 0x982   : > { %v1661_v63 = vmul.f32 %v2054_v2, %v1648_v61  ;;  %v1792_v61 = vstv %s2030_s29  ;;  %s1936_s29 = sshll.u32 %s688_s1, 4  ;;  %s1937_s29 = int_to_ptr.vmem [resolvable:$true] %s1936_s29 }
 0x983   : > { %v2173_v0 = vpop.f32.mrf.mxu1  ;;  %s2492_s0 = scalar_lea.vmem %s1937_s29, 128  ;;  %p2499_p13 = scmp.lt.s32.totalorder %s1937_s29, %s2497_s23 }
 0x984   : > { %v1669_v1 = vadd.f32 %v2055_v35, %v1661_v63  ;;  %v1794_v63 = vstv %s2031_s27  ;;  %p2493_p9 = scmp.ne.s32.totalorder %s1937_s29, %s2492_s0  ;;  %p2500_p0 = scmp.lt.s32.totalorder %s2498_s5, %s2492_s0 }
 0x985   : > { %v1651_v3 = vpop.f32.mrf.mxu1 }
 0x986   : > { %v2985_v5 = vadd.f32 %v2476_v4, %v1669_v1  ;;  %p2494_p10 = pnand %p2493_p9, %p2724_p5  ;;  %p2501_p1 = por %p2500_p0, %p2499_p13 }
 0x987   : > { %v2174_v6 = vpop.f32.mrf.mxu1 }
 0x988   : > { %v1673_v7 = vsel %vm715_vm0, %v2985_v5, 0.0  ;;  %p2495_p12 = pneg %p2494_p10 }
 0x989   : > { %1674 = vadd.xlane.f32.xlu1 %v1673_v7 }
 0x98a   : > { %p2502_p2 = pnand %p2501_p1, %p2495_p12 }
 0xa12   : > { %v1675_v9 = vpop.xlane.xlu1 %1674 }
 0xa13   : > { %v1676_v10 = vmul.f32 0.03125, %v1675_v9 }
 0xa15   : > { %v1677_v11 = vsub.f32 %v2985_v5, %v1676_v10 }
 0xa17   : > { %v1678_v12 = vmul.f32 %v1677_v11, %v1677_v11 }
 0xa19   : > { %v1679_v54 = vsel %vm715_vm0, %v1678_v12, 0.0 }
 0xa1a   : > { %1680 = vadd.xlane.f32.xlu0 %v1679_v54 }
 0xaa3   : > { %v1681_v16 = vpop.xlane.xlu0 %1680 }
 0xaa4   : > { %v1682_v17 = vmul.f32 0.03125, %v1681_v16 }
 0xaa6   : > { %v1683_v18 = vadd.f32 1e-05, %v1682_v17  ;;  %v2072_v17 = vld [vmem:[%s3111_s21] ss:$0 sm:$0xff] }
 0xaa8   : > { %2472 = vrsqrt.f32 %v1683_v18 }
 0xab5   : > { %v2473_v19 = vpop.eup %2472 }
 0xab6   : > { %v1685_v22 = vmul.f32 %v2473_v19, %v1677_v11 }
 0xab8   : > { %v1692_v38 = vmul.f32 %v2056_v20, %v1685_v22 }
 0xaba   : > { %v1699_v58 = vadd.f32 %v2057_v23, %v1692_v38 }
 0xabc   : > { %v1701_v15 = vmul.f32 %v1700_v24, %v1699_v58 }
 0xabe   : > { %v1703_v27 = vadd.f32 %v1702_v26, %v1701_v15 }
 0xac0   : > { %v1704_v28 = vmax.f32 %v1703_v27, -8.0 }
 0xac2   : > { %v1705_v42 = vmin.f32 %v1704_v28, 7.0 }
 0xac4   : > { %v2349_v62 = vcvt.f32.s32 %v1705_v42  ;;  %v2347_v21 = vand.u32 2147483647, %v1705_v42  ;;  %v2352_v33 = vand.u32 2147483648, %v1705_v42 }
 0xac6   : > { %v2350_v30 = vcvt.s32.f32 %v2349_v62  ;;  %vm2348_vm1 = vcmp.lt.f32.partialorder %v2347_v21, 8388608.0 }
 0xac8   : > { %v2351_v32 = vand.u32 2147483647, %v2350_v30 }
 0xaca   : > { %v2353_v41 = vor.u32 %v2352_v33, %v2351_v32 }
 0xacc   : > { %v2354_v34 = vsel %vm2348_vm1, %v2353_v41, %v1705_v42 }
 0xacd   : > { %v1707_v36 = vpack.c.bf16 %v2354_v34, %v2354_v34 }
 0xacf   : > { %2180 = vmatmul.mubr.msk.bf16.vlgmr.msra.gmra.mxu0 %vm715_vm0, %v1707_v36 }
 0xb8f   : > { %v1761_v49 = vpop.f32.mrf.mxu0 }
 0xb90   : > { %v1774_v50 = vmul.f32 %v2061_v48, %v1761_v49 }
 0xb91   : > { %v2181_v51 = vpop.f32.mrf.mxu0 }
 0xb92   : > { %v1782_v52 = vadd.f32 %v2062_v31, %v1774_v50 }
 0xb93   : > { %v1764_v43 = vpop.f32.mrf.mxu0 }
 0xb94   : > { %v1784_v53 = vmul.f32 0.044715, %v1782_v52  ;;  %v1783_v60 = vmul.f32 0.5, %v1782_v52 }
 0xb95   : > { %v2182_v25 = vpop.f32.mrf.mxu0 }
 0xb96   : > { %v1785_v55 = vmul.f32 %v1784_v53, %v1782_v52 }
 0xb98   : > { %v1786_v56 = vmul.f32 %v1785_v55, %v1782_v52 }
 0xb9a   : > { %v1787_v57 = vadd.f32 %v1786_v56, %v1782_v52 }
 0xb9c   : > { %v1788_v8 = vmul.f32 0.7978846, %v1787_v57 }
 0xb9e   : > { %2474 = vtanh.f32 %v1788_v8 }
 0xbab   : > { %v2475_v59 = vpop.eup %2474 }
 0xbac   : > { %v1790_v2 = vadd.f32 1.0, %v2475_v59 }
 0xbae   : > { %v1791_v35 = vmul.f32 %v1790_v2, %v1783_v60 }
 0xbb0   : > { %v1793_v0 = vmul.f32 %v1792_v61, %v1791_v35 }
 0xbb2   : > { %v1795_v1 = vadd.f32 %v1794_v63, %v1793_v0 }
 0xbb4   : > { %v1796_v3 = vmax.f32 %v1795_v1, -8.0 }
 0xbb6   : > { %v1797_v4 = vmin.f32 %v1796_v3, 7.0 }
 0xbb8   : > { %v2357_v6 = vcvt.f32.s32 %v1797_v4  ;;  %v2355_v9 = vand.u32 2147483647, %v1797_v4  ;;  %v2360_v11 = vand.u32 2147483648, %v1797_v4 }
 0xbba   : > { %v2358_v7 = vcvt.s32.f32 %v2357_v6  ;;  %vm2356_vm3 = vcmp.lt.f32.partialorder %v2355_v9, 8388608.0 }
 0xbbc   : > { %v2359_v10 = vand.u32 2147483647, %v2358_v7 }
 0xbbe   : > { %v2361_v12 = vor.u32 %v2360_v11, %v2359_v10 }
 0xbc0   : > { %v2362_v54 = vsel %vm2356_vm3, %v2361_v12, %v1797_v4 }
 0xbc1   : > { %v1799_v13 = vpack.c.bf16 %v2362_v54, %v2362_v54 }
 0xbc3   : > { %2200 = vmatmul.mubr.bf16.vlgmr.msra.gmra.mxu1 %v1799_v13 }
 0xc83   : > { %v1898_v16 = vpop.f32.mrf.mxu1 }
 0xc84   : > { %v1911_v18 = vmul.f32 %v2071_v14, %v1898_v16 }
 0xc85   : > { %v2201_v19 = vpop.f32.mrf.mxu1 }
 0xc86   : > { %v1919_v20 = vadd.f32 %v2072_v17, %v1911_v18 }
 0xc87   : > { %v1901_v22 = vpop.f32.mrf.mxu1 }
 0xc88   : > { %v1920_v23 = vadd.f32 %v1919_v20, %v2985_v5 }
 0xc89   : > { %v2202_v38 = vpop.f32.mrf.mxu1 }
 0xc8a   : > { %1921 = vst.msk [vmem:[%s688_s1] sm:$0xff] %vm715_vm0, %v1920_v23 }
 0xc8b   : > { %2505 = shalt.err (!%p2502_p2)
}
 0xc8c   : > { %s2506_s7 = scalar_lea.hbm %s3054_s25, 128  ;;  %s2510_s1 = scalar_lea.hbm %s3112_s22, 256 }
 0xc8d   : > { %p2507_p3 = scmp.ne.s32.totalorder %s3054_s25, %s2506_s7  ;;  %p2511_p8 = scmp.lt.s32.totalorder %s3054_s25, %s3112_s22 }
 0xc8e   : > { %p2512_p11 = scmp.lt.s32.totalorder %s2510_s1, %s2506_s7 }
 0xc8f   : > { %p2508_p4 = pnand %p2507_p3, %p2724_p5 }
 0xc90   : > { %p2513_p9 = por %p2512_p11, %p2511_p8 }
 0xc91   : > { %p2509_p7 = pneg %p2508_p4 }
 0xc93   : > { %p2514_p10 = pnand %p2513_p9, %p2509_p7 }
 0xc95   : > { %2517 = shalt.err (!%p2514_p10)
}
 0xc96   : > { %2367 = dma.vmem_to_hbm [thread:$0]  (%p2724_p5), %s1937_s29, 128, %s3054_s25, %s1923_s2  }
 0xc97 PF: > { %p2379_p12 = scmp.ge.s32.totalorder %s2556_s30, 2  ;;  %s1948_s23 = sand.u32 1, %s2544_s3  }
 0xc98   : > { %s1949_s5 = scalar_lea.sflag [#allocation3], %s1948_s23 }
 0xc99   : > { %p2374_p13 = pnand %p2379_p12, %p2728_p6 }
 0xc9b   : > { %p2375_p0 = pneg %p2374_p13 }
 0xc9d   : > { %2539 = dma.done.wait (%p2375_p0), %s1949_s5, 128  }
 0xc9e   : > { %2541 = vsyncadd (%p2375_p0), %s1949_s5, 4294967168  ;;  %s3143_s30 = sld [smem:[#allocation9_spill]]  ;;  %s3146_s3 = smov %s2548_s28 }
 0xc9f   : > { %s3144_s7 = sld [smem:[#allocation8_spill]] }
 0xca0   : > { %s3145_s29 = sld [smem:[#allocation10_spill]] }
 0xca4   : > { %p33_p1 = scmp.ge.s32.totalorder %s3143_s30, 4  }
 0xca5   : > { %s3147_s28 = smov %s3144_s7 }
 0xca6   :  { %35 = sbr.rel (!%p33_p1) target bundleno = 13 (0xd), region = 148 }
 0xcab   :  { %1954 = vsyncpa [#allocation3], 1 }
 0xcac   :  { %1956 = vsyncpa [#allocation3 + $0x1], 1 }
 0xcad   :  { %1957 = vsyncpa [#allocation4], 1 }
 0xcae   :  { %1959 = vsyncpa [#allocation4 + $0x1], 1 }

</bundles_post_ra>
